<compile_context>
chip_gen: v7x
topology: tpu7x:2x2x1
jax: 0.10.0
libtpu: 0.0.40
codegen_flags: <defaults>
</compile_context>

<pallas_src>
import numpy as np
import jax
import jax.numpy as jnp
from jax import lax
from jax.experimental import pallas as pl
from jax.experimental.pallas import tpu as pltpu


# ----------------------------- env / args config -----------------------------
N_SEATS = 2
TABLE_START, TABLE_LEN = 0, 4
PLAYER_STARTS = [4, 7]
PLAYER_LENS = [3, 3]
BOARD_START, BOARD_LEN = 10, 5
PUB_OBS_SIZE = 15          # 4 table + 3 + 3 players + 5 board
PRIV_OBS_SIZE = 4
N_RANGE_IDXS = 16

N_CARDS_UNITS = 32         # mpm_args.n_cards_state_units
N_MERGE_UNITS = 32         # mpm_args.n_merge_and_table_layer_units
RNN_UNITS = 32             # mpm_args.rnn_units

CARDS_IN = PRIV_OBS_SIZE + BOARD_LEN                 # cards_fc_1 in_features
TABLE_IN = TABLE_LEN + sum(PLAYER_LENS)              # table_state_fc in_features
PACK = N_CARDS_UNITS + N_MERGE_UNITS                 # 64: packed [cards | table]


# --------------------------------- helpers ------------------------------------
def _round_up(x, m):
    return ((x + m - 1) // m) * m


def _largest_divisor_leq(n, cap):
    for d in range(min(n, cap), 0, -1):
        if n % d == 0:
            return d
    return 1


def _pick_batch_tile(bp):
    """Multiple of 8 that divides bp; <= 256 so v7x can split batch across TCs."""
    if bp <= 256:
        return bp
    best = 8
    d = 8
    while d <= 256:
        if bp % d == 0:
            best = d
        d += 8
    return best


def _pick_time_chunk(t, b_tile):
    """Bound rows-per-chunk (~<=1024) so the working set fits scoped VMEM on
    v5e (16 MiB default) and v7x (64 MiB physical) while amortizing grid-step
    overhead."""
    cap = max(1, 1024 // b_tile)
    return _largest_divisor_leq(t, cap)


def _tile_rows(x, reps):
    """Replicate a (rows, cols) block `reps` times along sublanes with
    O(log reps) aligned concats (rows is a multiple of 8)."""
    if reps == 1:
        return x
    half = _tile_rows(x, reps // 2)
    out = jnp.concatenate([half, half], axis=0)
    if reps % 2:
        out = jnp.concatenate([out, x], axis=0)
    return out


# ------------------------------- fused kernel --------------------------------
def _make_fused_kernel(tc, b_tile, n_unroll):
    """tc: time steps per chunk, b_tile: batch rows per tile (multiple of 8)."""
    H = RNN_UNITS

    def kernel(pub_ref, priv_ref,
               wa_ref, wp_ref, ba_ref,
               wb_ref, bb_ref, wc_ref, bc_ref,
               wm_ref, bm_ref,
               wx_ref, bx_ref, wh_ref, bhn_ref,
               out_ref, xg_ref):
        i = pl.program_id(1)                # time-chunk axis (sequential)

        # Hidden state lives in out_ref (constant block index over the time
        # axis => VMEM resident). Initialize on the first chunk.
        @pl.when(i == 0)
        def _():
            out_ref[...] = jnp.zeros_like(out_ref)

        relu = lambda v: jnp.maximum(v, 0.0)
        dot = lambda a, w: jnp.dot(a, w, preferred_element_type=jnp.float32)

        pub = pub_ref[...]                  # (R, 15), rows are time-major
        priv = priv_ref[...]                # (b_tile, 4)

        # Per-batch addend of the first packed layer: [priv@W1p + b1 | bt].
        add1 = dot(priv, wp_ref[...]) + ba_ref[...]          # (b_tile, 64)
        add1_rep = _tile_rows(add1, tc)                      # (R, 64)

        # Packed pre-layers: lanes 0:32 = cards branch, lanes 32:64 = table.
        u = relu(dot(pub, wa_ref[...]) + add1_rep)           # [c1 | tb]
        u = relu(dot(u, wb_ref[...]) + bb_ref[...] + u)      # [c2 | tb]  (block-diag)
        u = relu(dot(u, wc_ref[...]) + bc_ref[...] + u)      # [c3 | tb]
        y = relu(dot(u, wm_ref[...]) + bm_ref[...])          # (R, 32) merge output

        # Hoisted input->gate projection, packed [r | z | n]; biases pre-folded.
        xg_ref[...] = dot(y, wx_ref[...]) + bx_ref[...]      # (R, 96)

        wh = wh_ref[...]                    # (32, 96) packed hidden->gate weights
        bhn = bhn_ref[...]                  # (1, 32)

        h0 = out_ref[...]                   # (b_tile, 32)
        n_outer = tc // n_unroll

        def gru_steps(base_row, h):
            # Statically unrolled inner block (<= n_unroll steps).
            for s_u in range(n_unroll):
                off = pl.multiple_of(base_row + s_u * b_tile, 8)
                xs = xg_ref[pl.ds(off, b_tile), :]           # (b_tile, 96)
                hh = dot(h, wh)                              # ONE MXU op / step
                r = jax.nn.sigmoid(xs[:, 0:H] + hh[:, 0:H])
                z = jax.nn.sigmoid(xs[:, H:2 * H] + hh[:, H:2 * H])
                n = jnp.tanh(xs[:, 2 * H:3 * H] + r * (hh[:, 2 * H:3 * H] + bhn))
                h = (1.0 - z) * n + z * h
            return h

        def outer_body(o, h):
            return gru_steps(o * (n_unroll * b_tile), h)

        out_ref[...] = lax.fori_loop(0, n_outer, outer_body, h0)

    return kernel


def run_fused(pub3, priv2, kp, *, T, Bp, b_tile, tc):
    H = RNN_UNITS
    R = tc * b_tile
    n_btiles = Bp // b_tile
    n_chunks = T // tc
    n_unroll = _largest_divisor_leq(tc, 8)
    kernel = _make_fused_kernel(tc, b_tile, n_unroll)

    weight_keys = ["wa", "wp", "ba", "wb", "bb", "wc", "bc",
                   "wm", "bm", "wx", "bx", "wh", "bhn"]
    weights = [kp[k] for k in weight_keys]

    def whole(arr):
        nd = arr.ndim
        return pl.BlockSpec(arr.shape, lambda *_: (0,) * nd)

    grid_spec = pltpu.PrefetchScalarGridSpec(
        num_scalar_prefetch=0,
        grid=(n_btiles, n_chunks),
        in_specs=[
            # pub rearranged host-side to (n_btiles, T*b_tile, 15): each block is
            # one time-chunk of one batch tile, already 2-D and time-major.
            pl.BlockSpec((None, R, PUB_OBS_SIZE), lambda b, i: (b, i, 0)),
            # priv passed once per batch tile (constant over the time axis).
            pl.BlockSpec((b_tile, PRIV_OBS_SIZE), lambda b, i: (b, 0)),
        ] + [whole(w) for w in weights],
        out_specs=pl.BlockSpec((b_tile, H), lambda b, i: (b, 0)),
        scratch_shapes=[pltpu.VMEM((R, 3 * H), jnp.float32)],   # packed gate buffer
    )
    return pl.pallas_call(
        kernel,
        out_shape=jax.ShapeDtypeStruct((Bp, H), jnp.float32),
        grid_spec=grid_spec,
        compiler_params=pltpu.CompilerParams(
            dimension_semantics=("parallel", "arbitrary"),   # batch || , time seq
            vmem_limit_bytes=32 * 1024 * 1024),
    )(pub3, priv2, *weights)


# --------------------------------- wrapper ------------------------------------
def main_poker_module_rnn_forward(pub_obses, range_idxs, kp, *,
                                  time_chunk=None, batch_tile=None):
    """pub_obses: (T, B, PUB_OBS_SIZE) f32, range_idxs: (B,) int32."""
    T, B, _ = pub_obses.shape
    priv = kp["lut"][range_idxs]                              # (B, PRIV)

    # Pad batch to a sublane multiple; padded rows evolve independently and are
    # dropped at the end.
    Bp = _round_up(B, 8)
    if Bp != B:
        pub_obses = jnp.pad(pub_obses, ((0, 0), (0, Bp - B), (0, 0)))
        priv = jnp.pad(priv, ((0, Bp - B), (0, 0)))

    b_tile = _pick_batch_tile(Bp) if batch_tile is None else batch_tile
    assert Bp % b_tile == 0 and b_tile % 8 == 0
    tc = _pick_time_chunk(T, b_tile) if time_chunk is None else time_chunk
    assert T % tc == 0, "time_chunk must divide T"

    n_btiles = Bp // b_tile
    # Batch-tile-major, time-major-within-tile layout: (n_btiles, T*b_tile, 15).
    # When n_btiles == 1 this is a free reshape (transpose of a size-1 axis).
    pub3 = (pub_obses.reshape(T, n_btiles, b_tile, PUB_OBS_SIZE)
            .transpose(1, 0, 2, 3)
            .reshape(n_btiles, T * b_tile, PUB_OBS_SIZE))

    out = run_fused(pub3, priv, kp, T=T, Bp=Bp, b_tile=b_tile, tc=tc)
    return out[:B]


# --------------------------- kernel-layout param prep --------------------------
def prepare_kernel_params(p):
    """Transform PyTorch-layout params into the fused kernel's layout (host-side)."""
    C, M, H = N_CARDS_UNITS, N_MERGE_UNITS, RNN_UNITS
    kp = {}

    # First packed layer: pub @ wa -> [cards_pre(32) | table_pre(32)].
    # Board/table/player column selection folded into zero-padded rows.
    w1 = p["w1"]                                                 # (C, 9)
    wt = p["wt"]                                                 # (M, 10)
    wa = jnp.zeros((PUB_OBS_SIZE, PACK), jnp.float32)
    wa = wa.at[BOARD_START:BOARD_START + BOARD_LEN, :C].set(w1[:, PRIV_OBS_SIZE:].T)
    wa = wa.at[TABLE_START:TABLE_START + TABLE_LEN, C:].set(wt[:, :TABLE_LEN].T)
    col = TABLE_LEN
    for s, l in zip(PLAYER_STARTS, PLAYER_LENS):
        wa = wa.at[s:s + l, C:].set(wt[:, col:col + l].T)
        col += l
    kp["wa"] = wa
    wp = jnp.zeros((PRIV_OBS_SIZE, PACK), jnp.float32)
    kp["wp"] = wp.at[:, :C].set(w1[:, :PRIV_OBS_SIZE].T)         # priv -> cards half
    kp["ba"] = jnp.concatenate([p["b1"], p["bt"]], axis=1)       # (1, 64)

    # Residual card layers as zero block-diagonal (64,64) weights so the table
    # half passes through unchanged (relu(tb)=tb since tb>=0); free on the MXU.
    def blockdiag(w):
        wb = jnp.zeros((PACK, PACK), jnp.float32)
        return wb.at[:C, :C].set(w.T)

    def padbias(b):
        return jnp.concatenate([b, jnp.zeros((1, M), jnp.float32)], axis=1)

    kp["wb"], kp["bb"] = blockdiag(p["w2"]), padbias(p["b2"])
    kp["wc"], kp["bc"] = blockdiag(p["w3"]), padbias(p["b3"])

    # Merge layer consumes packed [c3 | tb] directly.
    kp["wm"] = jnp.concatenate([p["wm_c"].T, p["wm_t"].T], axis=0)   # (64, 32)
    kp["bm"] = p["bm"]

    # GRU: packed [r|z|n] gate weights; fold b_hh[r], b_hh[z] into the projected
    # biases; only b_hh[n] stays in the serial loop.
    kp["wx"] = p["w_ih"].T                                        # (M, 3H)
    kp["wh"] = p["w_hh"].T                                        # (H, 3H)
    b_ih, b_hh = p["b_ih"], p["b_hh"]                             # (3, H) each
    kp["bx"] = jnp.concatenate(
        [b_ih[0] + b_hh[0], b_ih[1] + b_hh[1], b_ih[2]])[None, :]  # (1, 3H)
    kp["bhn"] = b_hh[2:3, :]                                      # (1, H)

    kp["lut"] = p["lut"]
    return kp


# ----------------------------- reference (pure JAX) ---------------------------
def reference_forward(pub_obses, range_idxs, p):
    T, B, _ = pub_obses.shape
    priv = p["lut"][range_idxs]
    priv_rep = jnp.broadcast_to(priv[None], (T, B, PRIV_OBS_SIZE))
    board = pub_obses[..., BOARD_START:BOARD_START + BOARD_LEN]
    cards = jnp.concatenate([priv_rep, board], axis=-1)
    table = jnp.concatenate(
        [pub_obses[..., TABLE_START:TABLE_START + TABLE_LEN]]
        + [pub_obses[..., s:s + l] for s, l in zip(PLAYER_STARTS, PLAYER_LENS)], axis=-1)
    relu = lambda v: jnp.maximum(v, 0.0)
    c1 = relu(cards @ p["w1"].T + p["b1"])
    c2 = relu(c1 @ p["w2"].T + p["b2"] + c1)
    c3 = relu(c2 @ p["w3"].T + p["b3"] + c2)
    t = relu(table @ p["wt"].T + p["bt"])
    y = relu(c3 @ p["wm_c"].T + t @ p["wm_t"].T + p["bm"])

    H = RNN_UNITS
    w_ih, w_hh, b_ih, b_hh = p["w_ih"], p["w_hh"], p["b_ih"], p["b_hh"]

    def step(h, x):
        r = jax.nn.sigmoid(x @ w_ih[0:H].T + b_ih[0] + h @ w_hh[0:H].T + b_hh[0])
        z = jax.nn.sigmoid(x @ w_ih[H:2 * H].T + b_ih[1] + h @ w_hh[H:2 * H].T + b_hh[1])
        n = jnp.tanh(x @ w_ih[2 * H:].T + b_ih[2] + r * (h @ w_hh[2 * H:].T + b_hh[2]))
        h_new = (1.0 - z) * n + z * h
        return h_new, h_new

    h0 = jnp.zeros((B, H), jnp.float32)
    h_last, _ = lax.scan(step, h0, y)
    return h_last


# ------------------------------ param construction ----------------------------
def make_params(key):
    ks = jax.random.split(key, 16)

    def linear(kw, kb, in_f, out_f):
        bound = 1.0 / np.sqrt(in_f)
        w = jax.random.uniform(kw, (out_f, in_f), jnp.float32, -bound, bound)
        b = jax.random.uniform(kb, (1, out_f), jnp.float32, -bound, bound)
        return w, b

    p = {}
    p["w1"], p["b1"] = linear(ks[0], ks[1], CARDS_IN, N_CARDS_UNITS)
    p["w2"], p["b2"] = linear(ks[2], ks[3], N_CARDS_UNITS, N_CARDS_UNITS)
    p["w3"], p["b3"] = linear(ks[4], ks[5], N_CARDS_UNITS, N_CARDS_UNITS)
    p["wt"], p["bt"] = linear(ks[6], ks[7], TABLE_IN, N_MERGE_UNITS)
    wm, bm = linear(ks[8], ks[9], N_CARDS_UNITS + N_MERGE_UNITS, N_MERGE_UNITS)
    p["wm_c"], p["wm_t"], p["bm"] = wm[:, :N_CARDS_UNITS], wm[:, N_CARDS_UNITS:], bm

    H = RNN_UNITS
    gb = 1.0 / np.sqrt(H)
    p["w_ih"] = jax.random.uniform(ks[10], (3 * H, N_MERGE_UNITS), jnp.float32, -gb, gb)
    p["w_hh"] = jax.random.uniform(ks[11], (3 * H, H), jnp.float32, -gb, gb)
    p["b_ih"] = jax.random.uniform(ks[12], (3, H), jnp.float32, -gb, gb)
    p["b_hh"] = jax.random.uniform(ks[13], (3, H), jnp.float32, -gb, gb)

    p["lut"] = jax.random.uniform(ks[14], (N_RANGE_IDXS, PRIV_OBS_SIZE), jnp.float32)
    return p


# ------------------------------------ main ------------------------------------
if __name__ == "__main__":
    key = jax.random.PRNGKey(0)
    k_obs, k_rng, k_par = jax.random.split(key, 3)

    T, B = 8, 8
    pub_obses = jax.random.uniform(k_obs, (T, B, PUB_OBS_SIZE), jnp.float32)
    range_idxs = jax.random.randint(k_rng, (B,), 0, N_RANGE_IDXS, jnp.int32)
    params = make_params(k_par)
    kparams = prepare_kernel_params(params)

    fwd = jax.jit(lambda po, ri: main_poker_module_rnn_forward(po, ri, kparams))
    out = jax.block_until_ready(fwd(pub_obses, range_idxs))

    ref = jax.block_until_ready(reference_forward(pub_obses, range_idxs, params))
    np.testing.assert_allclose(np.asarray(out), np.asarray(ref), rtol=1e-3, atol=1e-3)
    assert out.shape == (B, RNN_UNITS) and out.dtype == jnp.float32

    print("KERNEL_OK")
</pallas_src>

<mosaic_0001>
module attributes {stable_mosaic.version = 11 : i64} {
  func.func @kernel(%arg0: i32, %arg1: i32, %arg2: memref<1x64x15xf32, #tpu.memory_space<vmem>>, %arg3: memref<8x4xf32, #tpu.memory_space<vmem>>, %arg4: memref<15x64xf32, #tpu.memory_space<vmem>>, %arg5: memref<4x64xf32, #tpu.memory_space<vmem>>, %arg6: memref<1x64xf32, #tpu.memory_space<vmem>>, %arg7: memref<64x64xf32, #tpu.memory_space<vmem>>, %arg8: memref<1x64xf32, #tpu.memory_space<vmem>>, %arg9: memref<64x64xf32, #tpu.memory_space<vmem>>, %arg10: memref<1x64xf32, #tpu.memory_space<vmem>>, %arg11: memref<64x32xf32, #tpu.memory_space<vmem>>, %arg12: memref<1x32xf32, #tpu.memory_space<vmem>>, %arg13: memref<32x96xf32, #tpu.memory_space<vmem>>, %arg14: memref<1x96xf32, #tpu.memory_space<vmem>>, %arg15: memref<32x96xf32, #tpu.memory_space<vmem>>, %arg16: memref<1x32xf32, #tpu.memory_space<vmem>>, %arg17: memref<8x32xf32, #tpu.memory_space<vmem>>, %arg18: memref<64x96xf32, #tpu.memory_space<vmem>>) attributes {dimension_semantics = [#tpu.dimension_semantics<parallel>, #tpu.dimension_semantics<arbitrary>], iteration_bounds = array<i64: 1, 1>, scalar_prefetch = 0 : i64, scratch_operands = 1 : i64, tpu.core_type = #tpu.core_type<tc>, window_params = [{transform_indices = @transform_0, window_bounds = array<i64: 1, 64, 15>}, {transform_indices = @transform_1, window_bounds = array<i64: 8, 4>}, {pipeline_mode = #tpu.pipeline_mode<synchronous>, transform_indices = @transform_2, window_bounds = array<i64: 15, 64>}, {pipeline_mode = #tpu.pipeline_mode<synchronous>, transform_indices = @transform_3, window_bounds = array<i64: 4, 64>}, {pipeline_mode = #tpu.pipeline_mode<synchronous>, transform_indices = @transform_4, window_bounds = array<i64: 1, 64>}, {pipeline_mode = #tpu.pipeline_mode<synchronous>, transform_indices = @transform_5, window_bounds = array<i64: 64, 64>}, {pipeline_mode = #tpu.pipeline_mode<synchronous>, transform_indices = @transform_6, window_bounds = array<i64: 1, 64>}, {pipeline_mode = #tpu.pipeline_mode<synchronous>, transform_indices = @transform_7, window_bounds = array<i64: 64, 64>}, {pipeline_mode = #tpu.pipeline_mode<synchronous>, transform_indices = @transform_8, window_bounds = array<i64: 1, 64>}, {pipeline_mode = #tpu.pipeline_mode<synchronous>, transform_indices = @transform_9, window_bounds = array<i64: 64, 32>}, {pipeline_mode = #tpu.pipeline_mode<synchronous>, transform_indices = @transform_10, window_bounds = array<i64: 1, 32>}, {pipeline_mode = #tpu.pipeline_mode<synchronous>, transform_indices = @transform_11, window_bounds = array<i64: 32, 96>}, {pipeline_mode = #tpu.pipeline_mode<synchronous>, transform_indices = @transform_12, window_bounds = array<i64: 1, 96>}, {pipeline_mode = #tpu.pipeline_mode<synchronous>, transform_indices = @transform_13, window_bounds = array<i64: 32, 96>}, {pipeline_mode = #tpu.pipeline_mode<synchronous>, transform_indices = @transform_14, window_bounds = array<i64: 1, 32>}, {transform_indices = @transform_15, window_bounds = array<i64: 8, 32>}]} {
    %c0_i32 = arith.constant 0 : i32
    %0 = arith.cmpi eq, %arg1, %c0_i32 : i32
    %1 = arith.extui %0 : i1 to i32
    %c0_i32_0 = arith.constant 0 : i32
    %2 = arith.cmpi ne, %1, %c0_i32_0 : i32
    scf.if %2 {
      %cst_88 = arith.constant 0.000000e+00 : f32
      %317 = vector.broadcast %cst_88 : f32 to vector<8x32xf32>
      %c0_89 = arith.constant 0 : index
      %c0_90 = arith.constant 0 : index
      %318 = vector.load %arg17[%c0_89, %c0_90] : memref<8x32xf32, #tpu.memory_space<vmem>>, vector<8x32xf32>
      tpu.vector_store %arg17[%c0_89, %c0_90], %317 {strides = array<i32>} : memref<8x32xf32, #tpu.memory_space<vmem>>, vector<8x32xf32>,
    } else {
    }
    %c0 = arith.constant 0 : index
    %c0_1 = arith.constant 0 : index
    %c0_2 = arith.constant 0 : index
    %3 = vector.load %arg2[%c0, %c0_1, %c0_2] : memref<1x64x15xf32, #tpu.memory_space<vmem>>, vector<1x64x15xf32>
    %4 = vector.shape_cast %3 : vector<1x64x15xf32> to vector<64x15xf32>
    %c0_3 = arith.constant 0 : index
    %c0_4 = arith.constant 0 : index
    %5 = vector.load %arg3[%c0_3, %c0_4] : memref<8x4xf32, #tpu.memory_space<vmem>>, vector<8x4xf32>
    %c0_5 = arith.constant 0 : index
    %c0_6 = arith.constant 0 : index
    %6 = vector.load %arg5[%c0_5, %c0_6] : memref<4x64xf32, #tpu.memory_space<vmem>>, vector<4x64xf32>
    %cst = arith.constant dense<0.000000e+00> : vector<8x64xf32>
    %7 = tpu.matmul %5, %6, %cst {dimension_numbers = #tpu.dot_dimension_numbers<[1], [0], [0], [1], [0, 0, 1, 1], [], []>} : vector<8x4xf32>, vector<4x64xf32>, vector<8x64xf32> -> vector<8x64xf32>
    %c0_7 = arith.constant 0 : index
    %c0_8 = arith.constant 0 : index
    %8 = vector.load %arg6[%c0_7, %c0_8] : memref<1x64xf32, #tpu.memory_space<vmem>>, vector<1x64xf32>
    %9 = vector.broadcast %8 : vector<1x64xf32> to vector<8x64xf32>
    %10 = arith.addf %7, %9 : vector<8x64xf32>
    %11 = tpu.concatenate %10, %10 in 0 : vector<8x64xf32>, vector<8x64xf32> -> vector<16x64xf32>
    %12 = tpu.concatenate %11, %11 in 0 : vector<16x64xf32>, vector<16x64xf32> -> vector<32x64xf32>
    %13 = tpu.concatenate %12, %12 in 0 : vector<32x64xf32>, vector<32x64xf32> -> vector<64x64xf32>
    %c0_9 = arith.constant 0 : index
    %c0_10 = arith.constant 0 : index
    %14 = vector.load %arg4[%c0_9, %c0_10] : memref<15x64xf32, #tpu.memory_space<vmem>>, vector<15x64xf32>
    %cst_11 = arith.constant dense<0.000000e+00> : vector<64x64xf32>
    %15 = tpu.matmul %4, %14, %cst_11 {dimension_numbers = #tpu.dot_dimension_numbers<[1], [0], [0], [1], [0, 0, 1, 1], [], []>} : vector<64x15xf32>, vector<15x64xf32>, vector<64x64xf32> -> vector<64x64xf32>
    %16 = arith.addf %15, %13 : vector<64x64xf32>
    %cst_12 = arith.constant 0.000000e+00 : f32
    %17 = vector.broadcast %cst_12 : f32 to vector<64x64xf32>
    %18 = arith.maximumf %16, %17 : vector<64x64xf32>
    %c0_13 = arith.constant 0 : index
    %c0_14 = arith.constant 0 : index
    %19 = vector.load %arg7[%c0_13, %c0_14] : memref<64x64xf32, #tpu.memory_space<vmem>>, vector<64x64xf32>
    %cst_15 = arith.constant dense<0.000000e+00> : vector<64x64xf32>
    %20 = tpu.matmul %18, %19, %cst_15 {dimension_numbers = #tpu.dot_dimension_numbers<[1], [0], [0], [1], [0, 0, 1, 1], [], []>} : vector<64x64xf32>, vector<64x64xf32>, vector<64x64xf32> -> vector<64x64xf32>
    %c0_16 = arith.constant 0 : index
    %c0_17 = arith.constant 0 : index
    %21 = vector.load %arg8[%c0_16, %c0_17] : memref<1x64xf32, #tpu.memory_space<vmem>>, vector<1x64xf32>
    %22 = vector.broadcast %21 : vector<1x64xf32> to vector<64x64xf32>
    %23 = arith.addf %20, %22 : vector<64x64xf32>
    %24 = arith.addf %23, %18 : vector<64x64xf32>
    %cst_18 = arith.constant 0.000000e+00 : f32
    %25 = vector.broadcast %cst_18 : f32 to vector<64x64xf32>
    %26 = arith.maximumf %24, %25 : vector<64x64xf32>
    %c0_19 = arith.constant 0 : index
    %c0_20 = arith.constant 0 : index
    %27 = vector.load %arg9[%c0_19, %c0_20] : memref<64x64xf32, #tpu.memory_space<vmem>>, vector<64x64xf32>
    %cst_21 = arith.constant dense<0.000000e+00> : vector<64x64xf32>
    %28 = tpu.matmul %26, %27, %cst_21 {dimension_numbers = #tpu.dot_dimension_numbers<[1], [0], [0], [1], [0, 0, 1, 1], [], []>} : vector<64x64xf32>, vector<64x64xf32>, vector<64x64xf32> -> vector<64x64xf32>
    %c0_22 = arith.constant 0 : index
    %c0_23 = arith.constant 0 : index
    %29 = vector.load %arg10[%c0_22, %c0_23] : memref<1x64xf32, #tpu.memory_space<vmem>>, vector<1x64xf32>
    %30 = vector.broadcast %29 : vector<1x64xf32> to vector<64x64xf32>
    %31 = arith.addf %28, %30 : vector<64x64xf32>
    %32 = arith.addf %31, %26 : vector<64x64xf32>
    %cst_24 = arith.constant 0.000000e+00 : f32
    %33 = vector.broadcast %cst_24 : f32 to vector<64x64xf32>
    %34 = arith.maximumf %32, %33 : vector<64x64xf32>
    %c0_25 = arith.constant 0 : index
    %c0_26 = arith.constant 0 : index
    %35 = vector.load %arg11[%c0_25, %c0_26] : memref<64x32xf32, #tpu.memory_space<vmem>>, vector<64x32xf32>
    %cst_27 = arith.constant dense<0.000000e+00> : vector<64x32xf32>
    %36 = tpu.matmul %34, %35, %cst_27 {dimension_numbers = #tpu.dot_dimension_numbers<[1], [0], [0], [1], [0, 0, 1, 1], [], []>} : vector<64x64xf32>, vector<64x32xf32>, vector<64x32xf32> -> vector<64x32xf32>
    %c0_28 = arith.constant 0 : index
    %c0_29 = arith.constant 0 : index
    %37 = vector.load %arg12[%c0_28, %c0_29] : memref<1x32xf32, #tpu.memory_space<vmem>>, vector<1x32xf32>
    %38 = vector.broadcast %37 : vector<1x32xf32> to vector<64x32xf32>
    %39 = arith.addf %36, %38 : vector<64x32xf32>
    %cst_30 = arith.constant 0.000000e+00 : f32
    %40 = vector.broadcast %cst_30 : f32 to vector<64x32xf32>
    %41 = arith.maximumf %39, %40 : vector<64x32xf32>
    %c0_31 = arith.constant 0 : index
    %c0_32 = arith.constant 0 : index
    %42 = vector.load %arg13[%c0_31, %c0_32] : memref<32x96xf32, #tpu.memory_space<vmem>>, vector<32x96xf32>
    %cst_33 = arith.constant dense<0.000000e+00> : vector<64x96xf32>
    %43 = tpu.matmul %41, %42, %cst_33 {dimension_numbers = #tpu.dot_dimension_numbers<[1], [0], [0], [1], [0, 0, 1, 1], [], []>} : vector<64x32xf32>, vector<32x96xf32>, vector<64x96xf32> -> vector<64x96xf32>
    %c0_34 = arith.constant 0 : index
    %c0_35 = arith.constant 0 : index
    %44 = vector.load %arg14[%c0_34, %c0_35] : memref<1x96xf32, #tpu.memory_space<vmem>>, vector<1x96xf32>
    %45 = vector.broadcast %44 : vector<1x96xf32> to vector<64x96xf32>
    %46 = arith.addf %43, %45 : vector<64x96xf32>
    %c0_36 = arith.constant 0 : index
    %c0_37 = arith.constant 0 : index
    %47 = vector.load %arg18[%c0_36, %c0_37] : memref<64x96xf32, #tpu.memory_space<vmem>>, vector<64x96xf32>
    tpu.vector_store %arg18[%c0_36, %c0_37], %46 {strides = array<i32>} : memref<64x96xf32, #tpu.memory_space<vmem>>, vector<64x96xf32>,
    %c0_38 = arith.constant 0 : index
    %c0_39 = arith.constant 0 : index
    %48 = vector.load %arg15[%c0_38, %c0_39] : memref<32x96xf32, #tpu.memory_space<vmem>>, vector<32x96xf32>
    %c0_40 = arith.constant 0 : index
    %c0_41 = arith.constant 0 : index
    %49 = vector.load %arg16[%c0_40, %c0_41] : memref<1x32xf32, #tpu.memory_space<vmem>>, vector<1x32xf32>
    %c0_42 = arith.constant 0 : index
    %c0_43 = arith.constant 0 : index
    %50 = vector.load %arg17[%c0_42, %c0_43] : memref<8x32xf32, #tpu.memory_space<vmem>>, vector<8x32xf32>
    %c0_i32_44 = arith.constant 0 : i32
    %c64_i32 = arith.constant 64 : i32
    %51 = arith.muli %c0_i32_44, %c64_i32 : i32
    %c0_i32_45 = arith.constant 0 : i32
    %52 = arith.addi %51, %c0_i32_45 : i32
    %53 = tpu.assume_multiple %52, 8 : i32
    %54 = arith.index_cast %53 : i32 to index
    %c0_46 = arith.constant 0 : index
    %55 = vector.load %arg18[%54, %c0_46] : memref<64x96xf32, #tpu.memory_space<vmem>>, vector<8x96xf32>
    %cst_47 = arith.constant dense<0.000000e+00> : vector<8x96xf32>
    %56 = tpu.matmul %50, %48, %cst_47 {dimension_numbers = #tpu.dot_dimension_numbers<[1], [0], [0], [1], [0, 0, 1, 1], [], []>} : vector<8x32xf32>, vector<32x96xf32>, vector<8x96xf32> -> vector<8x96xf32>
    %57 = vector.extract_strided_slice %55 {offsets = [0, 0], sizes = [8, 32], strides = [1, 1]} : vector<8x96xf32> to vector<8x32xf32>
    %58 = vector.extract_strided_slice %56 {offsets = [0, 0], sizes = [8, 32], strides = [1, 1]} : vector<8x96xf32> to vector<8x32xf32>
    %59 = arith.addf %57, %58 : vector<8x32xf32>
    %60 = arith.negf %59 : vector<8x32xf32>
    %61 = math.exp %60 : vector<8x32xf32>
    %cst_48 = arith.constant 1.000000e+00 : f32
    %62 = vector.broadcast %cst_48 : f32 to vector<8x32xf32>
    %63 = arith.addf %62, %61 : vector<8x32xf32>
    %64 = arith.divf %62, %63 : vector<8x32xf32>
    %65 = vector.extract_strided_slice %55 {offsets = [0, 32], sizes = [8, 32], strides = [1, 1]} : vector<8x96xf32> to vector<8x32xf32>
    %66 = vector.extract_strided_slice %56 {offsets = [0, 32], sizes = [8, 32], strides = [1, 1]} : vector<8x96xf32> to vector<8x32xf32>
    %67 = arith.addf %65, %66 : vector<8x32xf32>
    %68 = arith.negf %67 : vector<8x32xf32>
    %69 = math.exp %68 : vector<8x32xf32>
    %cst_49 = arith.constant 1.000000e+00 : f32
    %70 = vector.broadcast %cst_49 : f32 to vector<8x32xf32>
    %71 = arith.addf %70, %69 : vector<8x32xf32>
    %72 = arith.divf %70, %71 : vector<8x32xf32>
    %73 = vector.extract_strided_slice %55 {offsets = [0, 64], sizes = [8, 32], strides = [1, 1]} : vector<8x96xf32> to vector<8x32xf32>
    %74 = vector.extract_strided_slice %56 {offsets = [0, 64], sizes = [8, 32], strides = [1, 1]} : vector<8x96xf32> to vector<8x32xf32>
    %75 = vector.broadcast %49 : vector<1x32xf32> to vector<8x32xf32>
    %76 = arith.addf %74, %75 : vector<8x32xf32>
    %77 = arith.mulf %64, %76 : vector<8x32xf32>
    %78 = arith.addf %73, %77 : vector<8x32xf32>
    %79 = math.tanh %78 : vector<8x32xf32>
    %cst_50 = arith.constant 1.000000e+00 : f32
    %80 = vector.broadcast %cst_50 : f32 to vector<8x32xf32>
    %81 = arith.subf %80, %72 : vector<8x32xf32>
    %82 = arith.mulf %81, %79 : vector<8x32xf32>
    %83 = arith.mulf %72, %50 : vector<8x32xf32>
    %84 = arith.addf %82, %83 : vector<8x32xf32>
    %c8_i32 = arith.constant 8 : i32
    %85 = arith.addi %51, %c8_i32 : i32
    %86 = tpu.assume_multiple %85, 8 : i32
    %87 = arith.index_cast %86 : i32 to index
    %c0_51 = arith.constant 0 : index
    %88 = vector.load %arg18[%87, %c0_51] : memref<64x96xf32, #tpu.memory_space<vmem>>, vector<8x96xf32>
    %cst_52 = arith.constant dense<0.000000e+00> : vector<8x96xf32>
    %89 = tpu.matmul %84, %48, %cst_52 {dimension_numbers = #tpu.dot_dimension_numbers<[1], [0], [0], [1], [0, 0, 1, 1], [], []>} : vector<8x32xf32>, vector<32x96xf32>, vector<8x96xf32> -> vector<8x96xf32>
    %90 = vector.extract_strided_slice %88 {offsets = [0, 0], sizes = [8, 32], strides = [1, 1]} : vector<8x96xf32> to vector<8x32xf32>
    %91 = vector.extract_strided_slice %89 {offsets = [0, 0], sizes = [8, 32], strides = [1, 1]} : vector<8x96xf32> to vector<8x32xf32>
    %92 = arith.addf %90, %91 : vector<8x32xf32>
    %93 = arith.negf %92 : vector<8x32xf32>
    %94 = math.exp %93 : vector<8x32xf32>
    %cst_53 = arith.constant 1.000000e+00 : f32
    %95 = vector.broadcast %cst_53 : f32 to vector<8x32xf32>
    %96 = arith.addf %95, %94 : vector<8x32xf32>
    %97 = arith.divf %95, %96 : vector<8x32xf32>
    %98 = vector.extract_strided_slice %88 {offsets = [0, 32], sizes = [8, 32], strides = [1, 1]} : vector<8x96xf32> to vector<8x32xf32>
    %99 = vector.extract_strided_slice %89 {offsets = [0, 32], sizes = [8, 32], strides = [1, 1]} : vector<8x96xf32> to vector<8x32xf32>
    %100 = arith.addf %98, %99 : vector<8x32xf32>
    %101 = arith.negf %100 : vector<8x32xf32>
    %102 = math.exp %101 : vector<8x32xf32>
    %cst_54 = arith.constant 1.000000e+00 : f32
    %103 = vector.broadcast %cst_54 : f32 to vector<8x32xf32>
    %104 = arith.addf %103, %102 : vector<8x32xf32>
    %105 = arith.divf %103, %104 : vector<8x32xf32>
    %106 = vector.extract_strided_slice %88 {offsets = [0, 64], sizes = [8, 32], strides = [1, 1]} : vector<8x96xf32> to vector<8x32xf32>
    %107 = vector.extract_strided_slice %89 {offsets = [0, 64], sizes = [8, 32], strides = [1, 1]} : vector<8x96xf32> to vector<8x32xf32>
    %108 = vector.broadcast %49 : vector<1x32xf32> to vector<8x32xf32>
    %109 = arith.addf %107, %108 : vector<8x32xf32>
    %110 = arith.mulf %97, %109 : vector<8x32xf32>
    %111 = arith.addf %106, %110 : vector<8x32xf32>
    %112 = math.tanh %111 : vector<8x32xf32>
    %cst_55 = arith.constant 1.000000e+00 : f32
    %113 = vector.broadcast %cst_55 : f32 to vector<8x32xf32>
    %114 = arith.subf %113, %105 : vector<8x32xf32>
    %115 = arith.mulf %114, %112 : vector<8x32xf32>
    %116 = arith.mulf %105, %84 : vector<8x32xf32>
    %117 = arith.addf %115, %116 : vector<8x32xf32>
    %c16_i32 = arith.constant 16 : i32
    %118 = arith.addi %51, %c16_i32 : i32
    %119 = tpu.assume_multiple %118, 8 : i32
    %120 = arith.index_cast %119 : i32 to index
    %c0_56 = arith.constant 0 : index
    %121 = vector.load %arg18[%120, %c0_56] : memref<64x96xf32, #tpu.memory_space<vmem>>, vector<8x96xf32>
    %cst_57 = arith.constant dense<0.000000e+00> : vector<8x96xf32>
    %122 = tpu.matmul %117, %48, %cst_57 {dimension_numbers = #tpu.dot_dimension_numbers<[1], [0], [0], [1], [0, 0, 1, 1], [], []>} : vector<8x32xf32>, vector<32x96xf32>, vector<8x96xf32> -> vector<8x96xf32>
    %123 = vector.extract_strided_slice %121 {offsets = [0, 0], sizes = [8, 32], strides = [1, 1]} : vector<8x96xf32> to vector<8x32xf32>
    %124 = vector.extract_strided_slice %122 {offsets = [0, 0], sizes = [8, 32], strides = [1, 1]} : vector<8x96xf32> to vector<8x32xf32>
    %125 = arith.addf %123, %124 : vector<8x32xf32>
    %126 = arith.negf %125 : vector<8x32xf32>
    %127 = math.exp %126 : vector<8x32xf32>
    %cst_58 = arith.constant 1.000000e+00 : f32
    %128 = vector.broadcast %cst_58 : f32 to vector<8x32xf32>
    %129 = arith.addf %128, %127 : vector<8x32xf32>
    %130 = arith.divf %128, %129 : vector<8x32xf32>
    %131 = vector.extract_strided_slice %121 {offsets = [0, 32], sizes = [8, 32], strides = [1, 1]} : vector<8x96xf32> to vector<8x32xf32>
    %132 = vector.extract_strided_slice %122 {offsets = [0, 32], sizes = [8, 32], strides = [1, 1]} : vector<8x96xf32> to vector<8x32xf32>
    %133 = arith.addf %131, %132 : vector<8x32xf32>
    %134 = arith.negf %133 : vector<8x32xf32>
    %135 = math.exp %134 : vector<8x32xf32>
    %cst_59 = arith.constant 1.000000e+00 : f32
    %136 = vector.broadcast %cst_59 : f32 to vector<8x32xf32>
    %137 = arith.addf %136, %135 : vector<8x32xf32>
    %138 = arith.divf %136, %137 : vector<8x32xf32>
    %139 = vector.extract_strided_slice %121 {offsets = [0, 64], sizes = [8, 32], strides = [1, 1]} : vector<8x96xf32> to vector<8x32xf32>
    %140 = vector.extract_strided_slice %122 {offsets = [0, 64], sizes = [8, 32], strides = [1, 1]} : vector<8x96xf32> to vector<8x32xf32>
    %141 = vector.broadcast %49 : vector<1x32xf32> to vector<8x32xf32>
    %142 = arith.addf %140, %141 : vector<8x32xf32>
    %143 = arith.mulf %130, %142 : vector<8x32xf32>
    %144 = arith.addf %139, %143 : vector<8x32xf32>
    %145 = math.tanh %144 : vector<8x32xf32>
    %cst_60 = arith.constant 1.000000e+00 : f32
    %146 = vector.broadcast %cst_60 : f32 to vector<8x32xf32>
    %147 = arith.subf %146, %138 : vector<8x32xf32>
    %148 = arith.mulf %147, %145 : vector<8x32xf32>
    %149 = arith.mulf %138, %117 : vector<8x32xf32>
    %150 = arith.addf %148, %149 : vector<8x32xf32>
    %c24_i32 = arith.constant 24 : i32
    %151 = arith.addi %51, %c24_i32 : i32
    %152 = tpu.assume_multiple %151, 8 : i32
    %153 = arith.index_cast %152 : i32 to index
    %c0_61 = arith.constant 0 : index
    %154 = vector.load %arg18[%153, %c0_61] : memref<64x96xf32, #tpu.memory_space<vmem>>, vector<8x96xf32>
    %cst_62 = arith.constant dense<0.000000e+00> : vector<8x96xf32>
    %155 = tpu.matmul %150, %48, %cst_62 {dimension_numbers = #tpu.dot_dimension_numbers<[1], [0], [0], [1], [0, 0, 1, 1], [], []>} : vector<8x32xf32>, vector<32x96xf32>, vector<8x96xf32> -> vector<8x96xf32>
    %156 = vector.extract_strided_slice %154 {offsets = [0, 0], sizes = [8, 32], strides = [1, 1]} : vector<8x96xf32> to vector<8x32xf32>
    %157 = vector.extract_strided_slice %155 {offsets = [0, 0], sizes = [8, 32], strides = [1, 1]} : vector<8x96xf32> to vector<8x32xf32>
    %158 = arith.addf %156, %157 : vector<8x32xf32>
    %159 = arith.negf %158 : vector<8x32xf32>
    %160 = math.exp %159 : vector<8x32xf32>
    %cst_63 = arith.constant 1.000000e+00 : f32
    %161 = vector.broadcast %cst_63 : f32 to vector<8x32xf32>
    %162 = arith.addf %161, %160 : vector<8x32xf32>
    %163 = arith.divf %161, %162 : vector<8x32xf32>
    %164 = vector.extract_strided_slice %154 {offsets = [0, 32], sizes = [8, 32], strides = [1, 1]} : vector<8x96xf32> to vector<8x32xf32>
    %165 = vector.extract_strided_slice %155 {offsets = [0, 32], sizes = [8, 32], strides = [1, 1]} : vector<8x96xf32> to vector<8x32xf32>
    %166 = arith.addf %164, %165 : vector<8x32xf32>
    %167 = arith.negf %166 : vector<8x32xf32>
    %168 = math.exp %167 : vector<8x32xf32>
    %cst_64 = arith.constant 1.000000e+00 : f32
    %169 = vector.broadcast %cst_64 : f32 to vector<8x32xf32>
    %170 = arith.addf %169, %168 : vector<8x32xf32>
    %171 = arith.divf %169, %170 : vector<8x32xf32>
    %172 = vector.extract_strided_slice %154 {offsets = [0, 64], sizes = [8, 32], strides = [1, 1]} : vector<8x96xf32> to vector<8x32xf32>
    %173 = vector.extract_strided_slice %155 {offsets = [0, 64], sizes = [8, 32], strides = [1, 1]} : vector<8x96xf32> to vector<8x32xf32>
    %174 = vector.broadcast %49 : vector<1x32xf32> to vector<8x32xf32>
    %175 = arith.addf %173, %174 : vector<8x32xf32>
    %176 = arith.mulf %163, %175 : vector<8x32xf32>
    %177 = arith.addf %172, %176 : vector<8x32xf32>
    %178 = math.tanh %177 : vector<8x32xf32>
    %cst_65 = arith.constant 1.000000e+00 : f32
    %179 = vector.broadcast %cst_65 : f32 to vector<8x32xf32>
    %180 = arith.subf %179, %171 : vector<8x32xf32>
    %181 = arith.mulf %180, %178 : vector<8x32xf32>
    %182 = arith.mulf %171, %150 : vector<8x32xf32>
    %183 = arith.addf %181, %182 : vector<8x32xf32>
    %c32_i32 = arith.constant 32 : i32
    %184 = arith.addi %51, %c32_i32 : i32
    %185 = tpu.assume_multiple %184, 8 : i32
    %186 = arith.index_cast %185 : i32 to index
    %c0_66 = arith.constant 0 : index
    %187 = vector.load %arg18[%186, %c0_66] : memref<64x96xf32, #tpu.memory_space<vmem>>, vector<8x96xf32>
    %cst_67 = arith.constant dense<0.000000e+00> : vector<8x96xf32>
    %188 = tpu.matmul %183, %48, %cst_67 {dimension_numbers = #tpu.dot_dimension_numbers<[1], [0], [0], [1], [0, 0, 1, 1], [], []>} : vector<8x32xf32>, vector<32x96xf32>, vector<8x96xf32> -> vector<8x96xf32>
    %189 = vector.extract_strided_slice %187 {offsets = [0, 0], sizes = [8, 32], strides = [1, 1]} : vector<8x96xf32> to vector<8x32xf32>
    %190 = vector.extract_strided_slice %188 {offsets = [0, 0], sizes = [8, 32], strides = [1, 1]} : vector<8x96xf32> to vector<8x32xf32>
    %191 = arith.addf %189, %190 : vector<8x32xf32>
    %192 = arith.negf %191 : vector<8x32xf32>
    %193 = math.exp %192 : vector<8x32xf32>
    %cst_68 = arith.constant 1.000000e+00 : f32
    %194 = vector.broadcast %cst_68 : f32 to vector<8x32xf32>
    %195 = arith.addf %194, %193 : vector<8x32xf32>
    %196 = arith.divf %194, %195 : vector<8x32xf32>
    %197 = vector.extract_strided_slice %187 {offsets = [0, 32], sizes = [8, 32], strides = [1, 1]} : vector<8x96xf32> to vector<8x32xf32>
    %198 = vector.extract_strided_slice %188 {offsets = [0, 32], sizes = [8, 32], strides = [1, 1]} : vector<8x96xf32> to vector<8x32xf32>
    %199 = arith.addf %197, %198 : vector<8x32xf32>
    %200 = arith.negf %199 : vector<8x32xf32>
    %201 = math.exp %200 : vector<8x32xf32>
    %cst_69 = arith.constant 1.000000e+00 : f32
    %202 = vector.broadcast %cst_69 : f32 to vector<8x32xf32>
    %203 = arith.addf %202, %201 : vector<8x32xf32>
    %204 = arith.divf %202, %203 : vector<8x32xf32>
    %205 = vector.extract_strided_slice %187 {offsets = [0, 64], sizes = [8, 32], strides = [1, 1]} : vector<8x96xf32> to vector<8x32xf32>
    %206 = vector.extract_strided_slice %188 {offsets = [0, 64], sizes = [8, 32], strides = [1, 1]} : vector<8x96xf32> to vector<8x32xf32>
    %207 = vector.broadcast %49 : vector<1x32xf32> to vector<8x32xf32>
    %208 = arith.addf %206, %207 : vector<8x32xf32>
    %209 = arith.mulf %196, %208 : vector<8x32xf32>
    %210 = arith.addf %205, %209 : vector<8x32xf32>
    %211 = math.tanh %210 : vector<8x32xf32>
    %cst_70 = arith.constant 1.000000e+00 : f32
    %212 = vector.broadcast %cst_70 : f32 to vector<8x32xf32>
    %213 = arith.subf %212, %204 : vector<8x32xf32>
    %214 = arith.mulf %213, %211 : vector<8x32xf32>
    %215 = arith.mulf %204, %183 : vector<8x32xf32>
    %216 = arith.addf %214, %215 : vector<8x32xf32>
    %c40_i32 = arith.constant 40 : i32
    %217 = arith.addi %51, %c40_i32 : i32
    %218 = tpu.assume_multiple %217, 8 : i32
    %219 = arith.index_cast %218 : i32 to index
    %c0_71 = arith.constant 0 : index
    %220 = vector.load %arg18[%219, %c0_71] : memref<64x96xf32, #tpu.memory_space<vmem>>, vector<8x96xf32>
    %cst_72 = arith.constant dense<0.000000e+00> : vector<8x96xf32>
    %221 = tpu.matmul %216, %48, %cst_72 {dimension_numbers = #tpu.dot_dimension_numbers<[1], [0], [0], [1], [0, 0, 1, 1], [], []>} : vector<8x32xf32>, vector<32x96xf32>, vector<8x96xf32> -> vector<8x96xf32>
    %222 = vector.extract_strided_slice %220 {offsets = [0, 0], sizes = [8, 32], strides = [1, 1]} : vector<8x96xf32> to vector<8x32xf32>
    %223 = vector.extract_strided_slice %221 {offsets = [0, 0], sizes = [8, 32], strides = [1, 1]} : vector<8x96xf32> to vector<8x32xf32>
    %224 = arith.addf %222, %223 : vector<8x32xf32>
    %225 = arith.negf %224 : vector<8x32xf32>
    %226 = math.exp %225 : vector<8x32xf32>
    %cst_73 = arith.constant 1.000000e+00 : f32
    %227 = vector.broadcast %cst_73 : f32 to vector<8x32xf32>
    %228 = arith.addf %227, %226 : vector<8x32xf32>
    %229 = arith.divf %227, %228 : vector<8x32xf32>
    %230 = vector.extract_strided_slice %220 {offsets = [0, 32], sizes = [8, 32], strides = [1, 1]} : vector<8x96xf32> to vector<8x32xf32>
    %231 = vector.extract_strided_slice %221 {offsets = [0, 32], sizes = [8, 32], strides = [1, 1]} : vector<8x96xf32> to vector<8x32xf32>
    %232 = arith.addf %230, %231 : vector<8x32xf32>
    %233 = arith.negf %232 : vector<8x32xf32>
    %234 = math.exp %233 : vector<8x32xf32>
    %cst_74 = arith.constant 1.000000e+00 : f32
    %235 = vector.broadcast %cst_74 : f32 to vector<8x32xf32>
    %236 = arith.addf %235, %234 : vector<8x32xf32>
    %237 = arith.divf %235, %236 : vector<8x32xf32>
    %238 = vector.extract_strided_slice %220 {offsets = [0, 64], sizes = [8, 32], strides = [1, 1]} : vector<8x96xf32> to vector<8x32xf32>
    %239 = vector.extract_strided_slice %221 {offsets = [0, 64], sizes = [8, 32], strides = [1, 1]} : vector<8x96xf32> to vector<8x32xf32>
    %240 = vector.broadcast %49 : vector<1x32xf32> to vector<8x32xf32>
    %241 = arith.addf %239, %240 : vector<8x32xf32>
    %242 = arith.mulf %229, %241 : vector<8x32xf32>
    %243 = arith.addf %238, %242 : vector<8x32xf32>
    %244 = math.tanh %243 : vector<8x32xf32>
    %cst_75 = arith.constant 1.000000e+00 : f32
    %245 = vector.broadcast %cst_75 : f32 to vector<8x32xf32>
    %246 = arith.subf %245, %237 : vector<8x32xf32>
    %247 = arith.mulf %246, %244 : vector<8x32xf32>
    %248 = arith.mulf %237, %216 : vector<8x32xf32>
    %249 = arith.addf %247, %248 : vector<8x32xf32>
    %c48_i32 = arith.constant 48 : i32
    %250 = arith.addi %51, %c48_i32 : i32
    %251 = tpu.assume_multiple %250, 8 : i32
    %252 = arith.index_cast %251 : i32 to index
    %c0_76 = arith.constant 0 : index
    %253 = vector.load %arg18[%252, %c0_76] : memref<64x96xf32, #tpu.memory_space<vmem>>, vector<8x96xf32>
    %cst_77 = arith.constant dense<0.000000e+00> : vector<8x96xf32>
    %254 = tpu.matmul %249, %48, %cst_77 {dimension_numbers = #tpu.dot_dimension_numbers<[1], [0], [0], [1], [0, 0, 1, 1], [], []>} : vector<8x32xf32>, vector<32x96xf32>, vector<8x96xf32> -> vector<8x96xf32>
    %255 = vector.extract_strided_slice %253 {offsets = [0, 0], sizes = [8, 32], strides = [1, 1]} : vector<8x96xf32> to vector<8x32xf32>
    %256 = vector.extract_strided_slice %254 {offsets = [0, 0], sizes = [8, 32], strides = [1, 1]} : vector<8x96xf32> to vector<8x32xf32>
    %257 = arith.addf %255, %256 : vector<8x32xf32>
    %258 = arith.negf %257 : vector<8x32xf32>
    %259 = math.exp %258 : vector<8x32xf32>
    %cst_78 = arith.constant 1.000000e+00 : f32
    %260 = vector.broadcast %cst_78 : f32 to vector<8x32xf32>
    %261 = arith.addf %260, %259 : vector<8x32xf32>
    %262 = arith.divf %260, %261 : vector<8x32xf32>
    %263 = vector.extract_strided_slice %253 {offsets = [0, 32], sizes = [8, 32], strides = [1, 1]} : vector<8x96xf32> to vector<8x32xf32>
    %264 = vector.extract_strided_slice %254 {offsets = [0, 32], sizes = [8, 32], strides = [1, 1]} : vector<8x96xf32> to vector<8x32xf32>
    %265 = arith.addf %263, %264 : vector<8x32xf32>
    %266 = arith.negf %265 : vector<8x32xf32>
    %267 = math.exp %266 : vector<8x32xf32>
    %cst_79 = arith.constant 1.000000e+00 : f32
    %268 = vector.broadcast %cst_79 : f32 to vector<8x32xf32>
    %269 = arith.addf %268, %267 : vector<8x32xf32>
    %270 = arith.divf %268, %269 : vector<8x32xf32>
    %271 = vector.extract_strided_slice %253 {offsets = [0, 64], sizes = [8, 32], strides = [1, 1]} : vector<8x96xf32> to vector<8x32xf32>
    %272 = vector.extract_strided_slice %254 {offsets = [0, 64], sizes = [8, 32], strides = [1, 1]} : vector<8x96xf32> to vector<8x32xf32>
    %273 = vector.broadcast %49 : vector<1x32xf32> to vector<8x32xf32>
    %274 = arith.addf %272, %273 : vector<8x32xf32>
    %275 = arith.mulf %262, %274 : vector<8x32xf32>
    %276 = arith.addf %271, %275 : vector<8x32xf32>
    %277 = math.tanh %276 : vector<8x32xf32>
    %cst_80 = arith.constant 1.000000e+00 : f32
    %278 = vector.broadcast %cst_80 : f32 to vector<8x32xf32>
    %279 = arith.subf %278, %270 : vector<8x32xf32>
    %280 = arith.mulf %279, %277 : vector<8x32xf32>
    %281 = arith.mulf %270, %249 : vector<8x32xf32>
    %282 = arith.addf %280, %281 : vector<8x32xf32>
    %c56_i32 = arith.constant 56 : i32
    %283 = arith.addi %51, %c56_i32 : i32
    %284 = tpu.assume_multiple %283, 8 : i32
    %285 = arith.index_cast %284 : i32 to index
    %c0_81 = arith.constant 0 : index
    %286 = vector.load %arg18[%285, %c0_81] : memref<64x96xf32, #tpu.memory_space<vmem>>, vector<8x96xf32>
    %cst_82 = arith.constant dense<0.000000e+00> : vector<8x96xf32>
    %287 = tpu.matmul %282, %48, %cst_82 {dimension_numbers = #tpu.dot_dimension_numbers<[1], [0], [0], [1], [0, 0, 1, 1], [], []>} : vector<8x32xf32>, vector<32x96xf32>, vector<8x96xf32> -> vector<8x96xf32>
    %288 = vector.extract_strided_slice %286 {offsets = [0, 0], sizes = [8, 32], strides = [1, 1]} : vector<8x96xf32> to vector<8x32xf32>
    %289 = vector.extract_strided_slice %287 {offsets = [0, 0], sizes = [8, 32], strides = [1, 1]} : vector<8x96xf32> to vector<8x32xf32>
    %290 = arith.addf %288, %289 : vector<8x32xf32>
    %291 = arith.negf %290 : vector<8x32xf32>
    %292 = math.exp %291 : vector<8x32xf32>
    %cst_83 = arith.constant 1.000000e+00 : f32
    %293 = vector.broadcast %cst_83 : f32 to vector<8x32xf32>
    %294 = arith.addf %293, %292 : vector<8x32xf32>
    %295 = arith.divf %293, %294 : vector<8x32xf32>
    %296 = vector.extract_strided_slice %286 {offsets = [0, 32], sizes = [8, 32], strides = [1, 1]} : vector<8x96xf32> to vector<8x32xf32>
    %297 = vector.extract_strided_slice %287 {offsets = [0, 32], sizes = [8, 32], strides = [1, 1]} : vector<8x96xf32> to vector<8x32xf32>
    %298 = arith.addf %296, %297 : vector<8x32xf32>
    %299 = arith.negf %298 : vector<8x32xf32>
    %300 = math.exp %299 : vector<8x32xf32>
    %cst_84 = arith.constant 1.000000e+00 : f32
    %301 = vector.broadcast %cst_84 : f32 to vector<8x32xf32>
    %302 = arith.addf %301, %300 : vector<8x32xf32>
    %303 = arith.divf %301, %302 : vector<8x32xf32>
    %304 = vector.extract_strided_slice %286 {offsets = [0, 64], sizes = [8, 32], strides = [1, 1]} : vector<8x96xf32> to vector<8x32xf32>
    %305 = vector.extract_strided_slice %287 {offsets = [0, 64], sizes = [8, 32], strides = [1, 1]} : vector<8x96xf32> to vector<8x32xf32>
    %306 = vector.broadcast %49 : vector<1x32xf32> to vector<8x32xf32>
    %307 = arith.addf %305, %306 : vector<8x32xf32>
    %308 = arith.mulf %295, %307 : vector<8x32xf32>
    %309 = arith.addf %304, %308 : vector<8x32xf32>
    %310 = math.tanh %309 : vector<8x32xf32>
    %cst_85 = arith.constant 1.000000e+00 : f32
    %311 = vector.broadcast %cst_85 : f32 to vector<8x32xf32>
    %312 = arith.subf %311, %303 : vector<8x32xf32>
    %313 = arith.mulf %312, %310 : vector<8x32xf32>
    %314 = arith.mulf %303, %282 : vector<8x32xf32>
    %315 = arith.addf %313, %314 : vector<8x32xf32>
    %c1_i32 = arith.constant 1 : i32
    %c0_86 = arith.constant 0 : index
    %c0_87 = arith.constant 0 : index
    %316 = vector.load %arg17[%c0_86, %c0_87] : memref<8x32xf32, #tpu.memory_space<vmem>>, vector<8x32xf32>
    tpu.vector_store %arg17[%c0_86, %c0_87], %315 {strides = array<i32>} : memref<8x32xf32, #tpu.memory_space<vmem>>, vector<8x32xf32>,
    return
  }
  func.func @transform_0(%arg0: i32, %arg1: i32) -> (i32, i32, i32) {
    %c0_i32 = arith.constant 0 : i32
    %c0_i32_0 = arith.constant 0 : i32
    return %arg0, %arg1, %c0_i32 : i32, i32, i32
  }
  func.func @transform_1(%arg0: i32, %arg1: i32) -> (i32, i32) {
    %c0_i32 = arith.constant 0 : i32
    %c0_i32_0 = arith.constant 0 : i32
    return %arg0, %c0_i32 : i32, i32
  }
  func.func @transform_2(%arg0: i32, %arg1: i32) -> (i32, i32) {
    %c0_i32 = arith.constant 0 : i32
    %c0_i32_0 = arith.constant 0 : i32
    %c0_i32_1 = arith.constant 0 : i32
    return %c0_i32, %c0_i32_0 : i32, i32
  }
  func.func @transform_3(%arg0: i32, %arg1: i32) -> (i32, i32) {
    %c0_i32 = arith.constant 0 : i32
    %c0_i32_0 = arith.constant 0 : i32
    %c0_i32_1 = arith.constant 0 : i32
    return %c0_i32, %c0_i32_0 : i32, i32
  }
  func.func @transform_4(%arg0: i32, %arg1: i32) -> (i32, i32) {
    %c0_i32 = arith.constant 0 : i32
    %c0_i32_0 = arith.constant 0 : i32
    %c0_i32_1 = arith.constant 0 : i32
    return %c0_i32, %c0_i32_0 : i32, i32
  }
  func.func @transform_5(%arg0: i32, %arg1: i32) -> (i32, i32) {
    %c0_i32 = arith.constant 0 : i32
    %c0_i32_0 = arith.constant 0 : i32
    %c0_i32_1 = arith.constant 0 : i32
    return %c0_i32, %c0_i32_0 : i32, i32
  }
  func.func @transform_6(%arg0: i32, %arg1: i32) -> (i32, i32) {
    %c0_i32 = arith.constant 0 : i32
    %c0_i32_0 = arith.constant 0 : i32
    %c0_i32_1 = arith.constant 0 : i32
    return %c0_i32, %c0_i32_0 : i32, i32
  }
  func.func @transform_7(%arg0: i32, %arg1: i32) -> (i32, i32) {
    %c0_i32 = arith.constant 0 : i32
    %c0_i32_0 = arith.constant 0 : i32
    %c0_i32_1 = arith.constant 0 : i32
    return %c0_i32, %c0_i32_0 : i32, i32
  }
  func.func @transform_8(%arg0: i32, %arg1: i32) -> (i32, i32) {
    %c0_i32 = arith.constant 0 : i32
    %c0_i32_0 = arith.constant 0 : i32
    %c0_i32_1 = arith.constant 0 : i32
    return %c0_i32, %c0_i32_0 : i32, i32
  }
  func.func @transform_9(%arg0: i32, %arg1: i32) -> (i32, i32) {
    %c0_i32 = arith.constant 0 : i32
    %c0_i32_0 = arith.constant 0 : i32
    %c0_i32_1 = arith.constant 0 : i32
    return %c0_i32, %c0_i32_0 : i32, i32
  }
  func.func @transform_10(%arg0: i32, %arg1: i32) -> (i32, i32) {
    %c0_i32 = arith.constant 0 : i32
    %c0_i32_0 = arith.constant 0 : i32
    %c0_i32_1 = arith.constant 0 : i32
    return %c0_i32, %c0_i32_0 : i32, i32
  }
  func.func @transform_11(%arg0: i32, %arg1: i32) -> (i32, i32) {
    %c0_i32 = arith.constant 0 : i32
    %c0_i32_0 = arith.constant 0 : i32
    %c0_i32_1 = arith.constant 0 : i32
    return %c0_i32, %c0_i32_0 : i32, i32
  }
  func.func @transform_12(%arg0: i32, %arg1: i32) -> (i32, i32) {
    %c0_i32 = arith.constant 0 : i32
    %c0_i32_0 = arith.constant 0 : i32
    %c0_i32_1 = arith.constant 0 : i32
    return %c0_i32, %c0_i32_0 : i32, i32
  }
  func.func @transform_13(%arg0: i32, %arg1: i32) -> (i32, i32) {
    %c0_i32 = arith.constant 0 : i32
    %c0_i32_0 = arith.constant 0 : i32
    %c0_i32_1 = arith.constant 0 : i32
    return %c0_i32, %c0_i32_0 : i32, i32
  }
  func.func @transform_14(%arg0: i32, %arg1: i32) -> (i32, i32) {
    %c0_i32 = arith.constant 0 : i32
    %c0_i32_0 = arith.constant 0 : i32
    %c0_i32_1 = arith.constant 0 : i32
    return %c0_i32, %c0_i32_0 : i32, i32
  }
  func.func @transform_15(%arg0: i32, %arg1: i32) -> (i32, i32) {
    %c0_i32 = arith.constant 0 : i32
    %c0_i32_0 = arith.constant 0 : i32
    return %arg0, %c0_i32 : i32, i32
  }
}

</mosaic_0001>

<bundles_post_ra>
// kernel: _lambda_.1
= control target key start
LH: loop header
LB: loop body
LE: loop exit
PB: predicated region body
PF: predicated region fallthrough
CT: control target
= control target key end

     0   :  { %20 = vsyncpa [#allocation4], 0  ;;  %s3022_s0 = inlined_call_operand.vmem [shape: f32[1,64,15], index: 0, kind: input, shape index: {}]   ;;  %s3023_s1 = inlined_call_operand.vmem [shape: f32[8,4], index: 1, kind: input, shape index: {}]   ;;  %s3024_s2 = inlined_call_operand.hbm [shape: f32[15,64], index: 2, kind: input, shape index: {}]   ;;  %s3025_s3 = inlined_call_operand.vmem [shape: f32[4,64], index: 3, kind: input, shape index: {}]   ;;  %s3026_s4 = inlined_call_operand.vmem [shape: f32[1,64], index: 4, kind: input, shape index: {}]   ;;  %s3027_s5 = inlined_call_operand.hbm [shape: f32[64,64], index: 5, kind: input, shape index: {}]   ;;  %s3028_s6 = inlined_call_operand.vmem [shape: f32[1,64], index: 6, kind: input, shape index: {}]   ;;  %s3029_s7 = inlined_call_operand.hbm [shape: f32[64,64], index: 7, kind: input, shape index: {}]   ;;  %s3030_s8 = inlined_call_operand.vmem [shape: f32[1,64], index: 8, kind: input, shape index: {}]   ;;  %s3031_s9 = inlined_call_operand.hbm [shape: f32[64,32], index: 9, kind: input, shape index: {}]   ;;  %s3032_s10 = inlined_call_operand.vmem [shape: f32[1,32], index: 10, kind: input, shape index: {}]   ;;  %s3033_s11 = inlined_call_operand.hbm [shape: f32[32,96], index: 11, kind: input, shape index: {}]   ;;  %s3034_s12 = inlined_call_operand.vmem [shape: f32[1,96], index: 12, kind: input, shape index: {}]   ;;  %s3035_s13 = inlined_call_operand.vmem [shape: f32[32,96], index: 13, kind: input, shape index: {}]   ;;  %s3036_s14 = inlined_call_operand.vmem [shape: f32[1,32], index: 14, kind: input, shape index: {}]   ;;  %s3037_s15 = inlined_call_operand.hbm [shape: f32[8,32], index: 15, kind: output, shape index: {}]  }
   0x1   :  { %21 = vsyncpa [#allocation7], 0 }
   0x2   :  { %22 = vsyncpa [#allocation10], 0 }
   0x3   :  { %23 = vsyncpa [#allocation5], 0  ;;  %s2558_s18 = smov [#allocation6]   ;;  %s2559_s20 = smov [#allocation9]  }
   0x4   :  { %s49_s19 = sshll.u32 %s2558_s18, 4  ;;  %s77_s21 = sshll.u32 %s2559_s20, 4  ;;  %s50_s19 = int_to_ptr.vmem [resolvable:$true] %s49_s19  ;;  %s2653_s21 = int_to_ptr.vmem [resolvable:$true] %s77_s21 }
   0x5   :  { %s2418_s24 = scalar_lea.hbm %s3027_s5, 1024 }
   0x6   :  { %p2419_p0 = scmp.ne.s32.totalorder %s3027_s5, %s2418_s24  ;;  %p2422_p1 = scmp.lt.u32.totalorder %s2418_s24, %s3027_s5 }
   0x8   :  { %p2424_p2 = pnand %p2422_p1, %p2419_p0 }
   0xa   :  { %2427 = shalt.err (!%p2424_p2)
}
   0xb   :  { %s2428_s29 = scalar_lea.vmem %s50_s19, 1024  ;;  %p2433_p4 = scmp.lt.s32.totalorder %s50_s19, %s50_s19 }
   0xc   :  { %p2429_p3 = scmp.ne.s32.totalorder %s50_s19, %s2428_s29  ;;  %p2434_p5 = scmp.lt.s32.totalorder %s2428_s29, %s2428_s29 }
   0xe   :  { %p2435_p6 = por %p2434_p5, %p2433_p4 }
  0x10   :  { %p2436_p7 = pnand %p2435_p6, %p2429_p3 }
  0x12   :  { %2439 = shalt.err (!%p2436_p7)
}
  0x13   :  { %s2560_s30 = smov 128   ;;  %s2561_s16 = smov 8  }
  0x14   :  { %55 = dma.hbm_to_vmem [thread:$0]  %s3027_s5, 1024, %s50_s19, [#allocation7], %s2560_s30, %s2560_s30, %s2561_s16  }
  0x15   :  { %s2440_s23 = scalar_lea.hbm %s3031_s9, 1024 }
  0x16   :  { %p2441_p8 = scmp.ne.s32.totalorder %s3031_s9, %s2440_s23  ;;  %p2444_p9 = scmp.lt.u32.totalorder %s2440_s23, %s3031_s9 }
  0x18   :  { %p2446_p10 = pnand %p2444_p9, %p2441_p8 }
  0x1a   :  { %2449 = shalt.err (!%p2446_p10)
}
  0x1b   :  { %s2450_s28 = scalar_lea.vmem %s2653_s21, 1024  ;;  %p2455_p12 = scmp.lt.s32.totalorder %s2653_s21, %s2653_s21 }
  0x1c   :  { %p2451_p11 = scmp.ne.s32.totalorder %s2653_s21, %s2450_s28  ;;  %p2456_p13 = scmp.lt.s32.totalorder %s2450_s28, %s2450_s28 }
  0x1e   :  { %p2457_p0 = por %p2456_p13, %p2455_p12 }
  0x20   :  { %p2458_p1 = pnand %p2457_p0, %p2451_p11 }
  0x22   :  { %2461 = shalt.err (!%p2458_p1)
}
  0x23   :  { %83 = dma.hbm_to_vmem [thread:$0]  %s3031_s9, 1024, %s2653_s21, [#allocation10], %s2560_s30, %s2560_s30, %s2561_s16  }
  0x24   :  { %s2562_s29 = smov [#allocation3]   ;;  %s2563_s18 = smov [#allocation8]  }
  0x25   :  { %s33_s17 = sshll.u32 %s2562_s29, 4  ;;  %s63_s20 = sshll.u32 %s2563_s18, 4  ;;  %s34_s17 = int_to_ptr.vmem [resolvable:$true] %s33_s17  ;;  %s2690_s20 = int_to_ptr.vmem [resolvable:$true] %s63_s20 }
  0x26   :  { %s2462_s24 = scalar_lea.hbm %s3024_s2, 256 }
  0x27   :  { %p2463_p2 = scmp.ne.s32.totalorder %s3024_s2, %s2462_s24  ;;  %p2466_p3 = scmp.lt.u32.totalorder %s2462_s24, %s3024_s2 }
  0x29   :  { %p2468_p4 = pnand %p2466_p3, %p2463_p2 }
  0x2b   :  { %2471 = shalt.err (!%p2468_p4)
}
  0x2c   :  { %s2472_s9 = scalar_lea.vmem %s34_s17, 256  ;;  %p2477_p6 = scmp.lt.s32.totalorder %s34_s17, %s34_s17 }
  0x2d   :  { %p2473_p5 = scmp.ne.s32.totalorder %s34_s17, %s2472_s9  ;;  %p2478_p7 = scmp.lt.s32.totalorder %s2472_s9, %s2472_s9 }
  0x2f   :  { %p2479_p8 = por %p2478_p7, %p2477_p6 }
  0x31   :  { %p2480_p9 = pnand %p2479_p8, %p2473_p5 }
  0x33   :  { %2483 = shalt.err (!%p2480_p9)
}
  0x34   :  { %39 = dma.hbm_to_vmem [thread:$0]  %s3024_s2, 256, %s34_s17, [#allocation4], %s2560_s30, %s2560_s30, %s2561_s16  }
  0x35   :  { %s2484_s18 = scalar_lea.hbm %s3029_s7, 1024 }
  0x36   :  { %p2485_p10 = scmp.ne.s32.totalorder %s3029_s7, %s2484_s18  ;;  %p2488_p11 = scmp.lt.u32.totalorder %s2484_s18, %s3029_s7 }
  0x38   :  { %p2490_p12 = pnand %p2488_p11, %p2485_p10 }
  0x3a   :  { %2493 = shalt.err (!%p2490_p12)
}
  0x3b   :  { %s2494_s26 = scalar_lea.vmem %s2690_s20, 1024  ;;  %p2499_p0 = scmp.lt.s32.totalorder %s2690_s20, %s2690_s20 }
  0x3c   :  { %p2495_p13 = scmp.ne.s32.totalorder %s2690_s20, %s2494_s26  ;;  %p2500_p1 = scmp.lt.s32.totalorder %s2494_s26, %s2494_s26 }
  0x3e   :  { %p2501_p2 = por %p2500_p1, %p2499_p0 }
  0x40   :  { %p2502_p3 = pnand %p2501_p2, %p2495_p13 }
  0x42   :  { %2505 = shalt.err (!%p2502_p3)
}
  0x43   :  { %69 = dma.hbm_to_vmem [thread:$0]  %s3029_s7, 1024, %s2690_s20, [#allocation7], %s2560_s30, %s2560_s30, %s2561_s16  }
  0x44   :  { %s2564_s27 = smov [#allocation11]   ;;  %s2506_s5 = scalar_lea.hbm %s3033_s11, 512 }
  0x45   :  { %s91_s28 = sshll.u32 %s2564_s27, 4  ;;  %p2507_p4 = scmp.ne.s32.totalorder %s3033_s11, %s2506_s5  ;;  %s92_s28 = int_to_ptr.vmem [resolvable:$true] %s91_s28 }
  0x46   :  { %p2510_p5 = scmp.lt.u32.totalorder %s2506_s5, %s3033_s11 }
  0x48   :  { %p2512_p6 = pnand %p2510_p5, %p2507_p4 }
  0x4a   :  { %2515 = shalt.err (!%p2512_p6)
}
  0x4b   :  { %s2516_s23 = scalar_lea.vmem %s92_s28, 512  ;;  %p2521_p8 = scmp.lt.s32.totalorder %s92_s28, %s92_s28 }
  0x4c   :  { %p2517_p7 = scmp.ne.s32.totalorder %s92_s28, %s2516_s23  ;;  %p2522_p9 = scmp.lt.s32.totalorder %s2516_s23, %s2516_s23 }
  0x4e   :  { %p2523_p10 = por %p2522_p9, %p2521_p8 }
  0x50   :  { %p2524_p11 = pnand %p2523_p10, %p2517_p7 }
  0x52   :  { %2527 = shalt.err (!%p2524_p11)
}
  0x53   :  { %97 = dma.hbm_to_vmem [thread:$0]  %s3033_s11, 512, %s92_s28, [#allocation10], %s2560_s30, %s2560_s30, %s2561_s16  }
  0x54   :  { %2550 = dma.done.wait [#allocation4], 256  }
  0x55   :  { %2551 = vsyncadd [#allocation4], 4294967040 }
  0x56   :  { %2552 = dma.done.wait [#allocation7], 2048  }
  0x57   :  { %2553 = vsyncadd [#allocation7], 4294965248 }
  0x58   :  { %2554 = dma.done.wait [#allocation10], 1536  }
  0x59   :  { %2555 = vsyncadd [#allocation10], 4294965760  ;;  %v2565_v0 = vmov 0.0   ;;  %vm2566_vm0 = vmmov 0   ;;  %vm247_vm1 = vcmask 1046528   ;;  %vm146_vm2 = vcmask 1043456  }
  0x5a   :  { %2032 = vmatprep.subr.mxu0 %v2565_v0  ;;  %2034 = vmatprep.mubr.msk.f32.mxu0 %vm2566_vm0, %v2565_v0  ;;  %vm2567_vm3 = vmmov 1   ;;  %vm142_vm5 = vcmask 31744   ;;  %vm222_vm6 = vcmask 121856   ;;  %v220_v1 = vld [vmem:[#allocation3] sm:$0xff]  ;;  %v221_v2 = vld [vmem:[#allocation3 + $0x8] sm:$0x7f] }
  0x5b   :  { %vm2246_vm4 = vmpackc.low %vm247_vm1, %vm2567_vm3  ;;  %v134_v3 = vld [vmem:[%s3025_s3] sm:$0xf]  ;;  %v2245_v4 = vpack.c.bf16 %v221_v2, %v220_v1  ;;  %v126_v7 = vld [vmem:[%s3022_s0 + $0x8] sm:$0xff]  ;;  %vm379_vm7 = vcmask 523264   ;;  %vm123_vm8 = vcmask 261120   ;;  %s2569_s27 = smov 64  }
  0x5c   :  { %2033 = vmatpush3.msk.msra.mxu0 %vm146_vm2, %v134_v3  ;;  %v133_v5 = vld [vmem:[%s3023_s1] sm:$0xff]  ;;  %v364_v8 = vld [vmem:[#allocation6] sm:$0xff]  ;;  %v365_v9 = vld [vmem:[#allocation6 + $0x8] sm:$0xff]  ;;  %124 = vst.msk [vmem:[#allocation12] sm:$0xff] %vm123_vm8, %v2565_v0  ;;  %vm978_vm9 = vcmask 785408   ;;  %s2572_s21 = smov [#allocation12]  }
  0x5d   :  { %v125_v6 = vld [vmem:[%s3022_s0] sm:$0xff]  ;;  %2035 = vmatmul.mubr.msk.f32.vlgmr.msra.gmra.mrb[0].mxu0 %vm142_vm5, %v133_v5  ;;  %2247 = vmatprep.subr.msk.bf16.mxu1 %vm2246_vm4, %v2245_v4  ;;  %v127_v11 = vld [vmem:[%s3022_s0 + $0x10] sm:$0xff]  ;;  %v2251_v12 = vpack.c.bf16 %v365_v9, %v364_v8  ;;  %v367_v13 = vld [vmem:[#allocation6 + $0x18] sm:$0xff]  ;;  %s1844_s5 = sshll.u32 %s2572_s21, 4  ;;  %s1845_s5 = int_to_ptr.vmem [resolvable:$true] %s1844_s5 }
  0x5e   :  { %2041 = vmatprep.mubr.msk.f32.mxu1 %vm222_vm6, %v125_v6  ;;  %2250 = vmatpush3.bf16.msk.msra.mxu1 %vm2246_vm4, %v2245_v4  ;;  %v366_v10 = vld [vmem:[#allocation6 + $0x10] sm:$0xff]  ;;  %v128_v15 = vld [vmem:[%s3022_s0 + $0x18] sm:$0xff]  ;;  %v130_v17 = vld [vmem:[%s3022_s0 + $0x28] sm:$0xff]  ;;  %s2528_s19 = scalar_lea.vmem %s1845_s5, 128  ;;  %p2533_p13 = scmp.lt.s32.totalorder %s1845_s5, %s1845_s5 }
  0x5f   :  { %v2255_v14 = vpack.c.bf16 %v367_v13, %v366_v10  ;;  %2252 = vmatprep.subr.bf16.mxu0 %v2251_v12  ;;  %v129_v16 = vld [vmem:[%s3022_s0 + $0x20] sm:$0xff]  ;;  %v131_v18 = vld [vmem:[%s3022_s0 + $0x30] sm:$0xff]  ;;  %v132_v19 = vld [vmem:[%s3022_s0 + $0x38] sm:$0xff]  ;;  %p2529_p12 = scmp.ne.s32.totalorder %s1845_s5, %s2528_s19  ;;  %p2534_p0 = scmp.lt.s32.totalorder %s2528_s19, %s2528_s19 }
  0x60   :  { %2254 = vmatpush3.bf16.msra.mxu0 %v2251_v12  ;;  %v368_v20 = vld [vmem:[#allocation6 + $0x20] sm:$0xff]  ;;  %v369_v21 = vld [vmem:[#allocation6 + $0x28] sm:$0xff]  ;;  %v370_v23 = vld [vmem:[#allocation6 + $0x30] sm:$0xff] }
  0x61   :  { %2042 = vmatmul.mubr.msk.f32.vlgmr.msra.gmra.mrb[0].mxu1 %vm222_vm6, %v126_v7  ;;  %2256 = vmatprep.subr.bf16.mxu0 %v2255_v14  ;;  %v2259_v22 = vpack.c.bf16 %v369_v21, %v368_v20  ;;  %v371_v24 = vld [vmem:[#allocation6 + $0x38] sm:$0xff]  ;;  %v525_v26 = vld [vmem:[#allocation8] sm:$0xff]  ;;  %v526_v27 = vld [vmem:[#allocation8 + $0x8] sm:$0xff]  ;;  %p2535_p1 = por %p2534_p0, %p2533_p13 }
  0x62   :  { %2044 = vmatprep.mubr.msk.f32.mxu1 %vm222_vm6, %v127_v11  ;;  %v2263_v25 = vpack.c.bf16 %v371_v24, %v370_v23  ;;  %v527_v28 = vld [vmem:[#allocation8 + $0x10] sm:$0xff]  ;;  %v2267_v29 = vpack.c.bf16 %v526_v27, %v525_v26  ;;  %v528_v30 = vld [vmem:[#allocation8 + $0x18] sm:$0xff]  ;;  %v529_v60 = vld [vmem:[#allocation8 + $0x20] sm:$0xff] }
  0x63   :  { %v2271_v31 = vpack.c.bf16 %v528_v30, %v527_v28  ;;  %v1855_v32 = vld [vmem:[%s3026_s4] ss:$0 sm:$0xff]  ;;  %v530_v61 = vld [vmem:[#allocation8 + $0x28] sm:$0xff]  ;;  %v532_v1 = vld [vmem:[#allocation8 + $0x38] sm:$0xff]  ;;  %p2536_p2 = pnand %p2535_p1, %p2529_p12 }
  0x64   :  { %2258 = vmatpush3.bf16.msra.mxu0 %v2255_v14  ;;  %2268 = vmatprep.subr.bf16.mxu1 %v2267_v29  ;;  %v2275_v62 = vpack.c.bf16 %v530_v61, %v529_v60  ;;  %v531_v63 = vld [vmem:[#allocation8 + $0x30] sm:$0xff]  ;;  %v685_v3 = vld [vmem:[#allocation9] sm:$0xff]  ;;  %v686_v4 = vld [vmem:[#allocation9 + $0x8] sm:$0xff] }
  0x65   :  { %2045 = vmatmul.mubr.msk.f32.gmra.mrb[2].mxu1 %vm222_vm6, %v128_v15  ;;  %2260 = vmatprep.subr.bf16.mxu0 %v2259_v22  ;;  %v2279_v2 = vpack.c.bf16 %v532_v1, %v531_v63  ;;  %v687_v5 = vld [vmem:[#allocation9 + $0x10] sm:$0xff]  ;;  %v2283_v6 = vpack.c.bf16 %v686_v4, %v685_v3  ;;  %v688_v7 = vld [vmem:[#allocation9 + $0x18] sm:$0xff] }
  0x66   :  { %2047 = vmatprep.mubr.msk.f32.mxu1 %vm222_vm6, %v129_v16  ;;  %2270 = vmatpush3.bf16.msra.mxu1 %v2267_v29  ;;  %v2287_v8 = vpack.c.bf16 %v688_v7, %v687_v5  ;;  %v1867_v9 = vld [vmem:[%s3028_s6] ss:$0 sm:$0xff] }
  0x67   :  { %2272 = vmatprep.subr.bf16.mxu1 %v2271_v31  ;;  %v987_v61 = vld [vmem:[%s3035_s13] sm:$0xff] }
  0x68   :  { %2262 = vmatpush3.bf16.msra.mxu0 %v2259_v22 }
  0x69   :  { %2048 = vmatmul.mubr.msk.f32.gmra.mrb[4].mxu1 %vm222_vm6, %v130_v17  ;;  %2264 = vmatprep.subr.bf16.mxu0 %v2263_v25 }
  0x6a   :  { %2050 = vmatprep.mubr.msk.f32.mxu1 %vm222_vm6, %v131_v18  ;;  %2274 = vmatpush3.bf16.msra.mxu1 %v2271_v31 }
  0x6b   :  { %2276 = vmatprep.subr.bf16.mxu1 %v2275_v62 }
  0x6c   :  { %2266 = vmatpush3.bf16.msra.mxu0 %v2263_v25 }
  0x6d   :  { %2051 = vmatmul.mubr.msk.f32.gmra.mrb[6].mxu1 %vm222_vm6, %v132_v19  ;;  %2284 = vmatprep.subr.bf16.mxu0 %v2283_v6 }
  0x6e   :  { %2278 = vmatpush3.bf16.msra.mxu1 %v2275_v62  ;;  %v988_v62 = vld [vmem:[%s3035_s13 + $0x8] sm:$0xff] }
  0x6f   :  { %2280 = vmatprep.subr.bf16.mxu1 %v2279_v2 }
  0x72   :  { %2282 = vmatpush3.bf16.msra.mxu1 %v2279_v2 }
 0x130   :  { %v216_v33 = vpop.f32.mrb[0].mxu0 }
 0x131   :  { %v2036_v34 = vpop.f32.mrb[1].mxu0  ;;  %v217_v35 = vadd.f32 %v1855_v32, %v216_v33 }
 0x134   :  { %v2043_v36 = vpop.f32.mrb[0].mxu1 }
 0x135   :  { %v323_v37 = vadd.f32 %v2043_v36, %v217_v35  ;;  %v317_v38 = vpop.f32.mrb[1].mxu1 }
 0x136   :  { %v318_v39 = vadd.f32 %v317_v38, %v217_v35 }
 0x137   :  { %v357_v42 = vmax.f32 %v323_v37, 0.0 }
 0x138   :  { %v356_v40 = vmax.f32 %v318_v39, 0.0  ;;  %v2046_v41 = vpop.f32.mrb[2].mxu1 }
 0x139   :  { %v333_v43 = vadd.f32 %v2046_v41, %v217_v35  ;;  %v327_v44 = vpop.f32.mrb[3].mxu1 }
 0x13a   :  { %v328_v45 = vadd.f32 %v327_v44, %v217_v35  ;;  %2069 = vmatprep.mubr.msk.f32.mxu0 %vm379_vm7, %v356_v40 }
 0x13b   :  { %2070 = vmatmul.mubr.msk.f32.vlgmr.msra.gmra.mrb[2].mxu0 %vm379_vm7, %v357_v42  ;;  %v359_v48 = vmax.f32 %v333_v43, 0.0  ;;  %v690_v43 = vld [vmem:[#allocation9 + $0x28] sm:$0xff] }
 0x13c   :  { %v358_v46 = vmax.f32 %v328_v45, 0.0  ;;  %v2049_v47 = vpop.f32.mrb[4].mxu1  ;;  %2286 = vmatpush3.bf16.msra.mxu0 %v2283_v6  ;;  %v691_v45 = vld [vmem:[#allocation9 + $0x30] sm:$0xff]  ;;  %v2859_v6 = vpack.c.bf16 %v988_v62, %v987_v61 }
 0x13d   :  { %v343_v49 = vadd.f32 %v2049_v47, %v217_v35  ;;  %v337_v50 = vpop.f32.mrb[5].mxu1  ;;  %2288 = vmatprep.subr.bf16.mxu0 %v2287_v8 }
 0x13e   :  { %v338_v51 = vadd.f32 %v337_v50, %v217_v35  ;;  %2072 = vmatprep.mubr.msk.f32.mxu0 %vm379_vm7, %v358_v46  ;;  %v838_v50 = vld [vmem:[#allocation11 + $0x8] sm:$0xff] }
 0x13f   :  { %2073 = vmatmul.mubr.msk.f32.gmra.mrb[4].mxu0 %vm379_vm7, %v359_v48  ;;  %v361_v54 = vmax.f32 %v343_v49, 0.0  ;;  %v837_v49 = vld [vmem:[#allocation11] sm:$0xff] }
 0x140   :  { %v360_v52 = vmax.f32 %v338_v51, 0.0  ;;  %v2052_v53 = vpop.f32.mrb[6].mxu1  ;;  %2290 = vmatpush3.bf16.msra.mxu0 %v2287_v8  ;;  %v839_v51 = vld [vmem:[#allocation11 + $0x10] sm:$0xff] }
 0x141   :  { %v2790_v55 = vadd.f32 %v2052_v53, %v217_v35  ;;  %v347_v56 = vpop.f32.mrb[7].mxu1  ;;  %v840_v53 = vld [vmem:[#allocation11 + $0x18] sm:$0xff] }
 0x142   :  { %v348_v57 = vadd.f32 %v347_v56, %v217_v35  ;;  %2075 = vmatprep.mubr.msk.f32.mxu0 %vm379_vm7, %v360_v52 }
 0x143   :  { %2076 = vmatmul.mubr.msk.f32.gmra.mrb[6].mxu0 %vm379_vm7, %v361_v54  ;;  %v363_v59 = vmax.f32 %v2790_v55, 0.0  ;;  %v1876_v55 = vld [vmem:[%s3030_s8] ss:$0 sm:$0xff] }
 0x144   :  { %v362_v58 = vmax.f32 %v348_v57, 0.0 }
 0x146   :  { %2078 = vmatprep.mubr.msk.f32.mxu0 %vm379_vm7, %v362_v58 }
 0x147   :  { %2079 = vmatmul.mubr.msk.f32.gmra.mrb[8].mxu0 %vm379_vm7, %v363_v59 }
 0x20e   :  { %v2071_v10 = vpop.f32.mrb[2].mxu0 }
 0x20f   :  { %v476_v11 = vadd.f32 %v2071_v10, %v1867_v9  ;;  %v470_v12 = vpop.f32.mrb[3].mxu0  ;;  %v990_v10 = vld [vmem:[%s3035_s13 + $0x18] sm:$0xff] }
 0x210   :  { %v471_v13 = vadd.f32 %v1867_v9, %v470_v12 }
 0x211   :  { %v2800_v14 = vadd.f32 %v476_v11, %v357_v42  ;;  %v689_v42 = vld [vmem:[#allocation9 + $0x20] sm:$0xff] }
 0x212   :  { %v2802_v15 = vadd.f32 %v471_v13, %v356_v40  ;;  %v2074_v16 = vpop.f32.mrb[4].mxu0  ;;  %v2291_v44 = vpack.c.bf16 %v690_v43, %v689_v42 }
 0x213   :  { %v486_v17 = vadd.f32 %v2074_v16, %v1867_v9  ;;  %v480_v18 = vpop.f32.mrb[5].mxu0  ;;  %v518_v21 = vmax.f32 %v2800_v14, 0.0 }
 0x214   :  { %v517_v19 = vmax.f32 %v2802_v15, 0.0  ;;  %v481_v20 = vadd.f32 %v1867_v9, %v480_v18  ;;  %2292 = vmatprep.subr.bf16.mxu0 %v2291_v44 }
 0x215   :  { %v2806_v22 = vadd.f32 %v486_v17, %v359_v48  ;;  %2294 = vmatpush3.bf16.msra.mxu0 %v2291_v44  ;;  %v2568_v48 = vmov 0.0|0.0  }
 0x216   :  { %v2808_v23 = vadd.f32 %v481_v20, %v358_v46  ;;  %v2077_v24 = vpop.f32.mrb[6].mxu0  ;;  %2097 = vmatprep.mubr.msk.f32.mxu1 %vm379_vm7, %v517_v19  ;;  %v692_v46 = vld [vmem:[#allocation9 + $0x38] sm:$0xff] }
 0x217   :  { %v496_v25 = vadd.f32 %v2077_v24, %v1867_v9  ;;  %v490_v26 = vpop.f32.mrb[7].mxu0  ;;  %2098 = vmatmul.mubr.msk.f32.vlgmr.msra.gmra.mrb[8].mxu1 %vm379_vm7, %v518_v21  ;;  %v520_v29 = vmax.f32 %v2806_v22, 0.0  ;;  %v2295_v47 = vpack.c.bf16 %v692_v46, %v691_v45 }
 0x218   :  { %v519_v27 = vmax.f32 %v2808_v23, 0.0  ;;  %v491_v28 = vadd.f32 %v1867_v9, %v490_v26 }
 0x219   :  { %v2816_v30 = vadd.f32 %v496_v25, %v361_v54  ;;  %2296 = vmatprep.subr.bf16.mxu0 %v2295_v47  ;;  %v2303_v54 = vpack.c.bf16 %v840_v53, %v839_v51 }
 0x21a   :  { %v2818_v31 = vadd.f32 %v491_v28, %v360_v52  ;;  %v2080_v32 = vpop.f32.mrb[8].mxu0  ;;  %2100 = vmatprep.mubr.msk.f32.mxu1 %vm379_vm7, %v519_v27  ;;  %2298 = vmatpush3.bf16.msra.mxu0 %v2295_v47  ;;  %v2299_v52 = vpack.c.bf16 %v838_v50, %v837_v49 }
 0x21b   :  { %v506_v33 = vadd.f32 %v2080_v32, %v1867_v9  ;;  %v500_v34 = vpop.f32.mrb[9].mxu0  ;;  %2101 = vmatmul.mubr.msk.f32.gmra.mrb[10].mxu1 %vm379_vm7, %v520_v29  ;;  %v522_v37 = vmax.f32 %v2816_v30, 0.0  ;;  %2307 = vmatprep.subr.bf16.mxu0 %v2568_v48  ;;  %v1905_v32 = vld [vmem:[%s3036_s14] ss:$0 sm:$0xff] }
 0x21c   :  { %v521_v35 = vmax.f32 %v2818_v31, 0.0  ;;  %v501_v36 = vadd.f32 %v1867_v9, %v500_v34  ;;  %2300 = vmatprep.subr.bf16.mxu1 %v2299_v52  ;;  %v989_v9 = vld [vmem:[%s3035_s13 + $0x10] sm:$0xff]  ;;  %1079 = vrot.lane.b32.xlu0 %v1905_v32, %s2569_s27 }
 0x21d   :  { %v2826_v38 = vadd.f32 %v506_v33, %v363_v59  ;;  %2302 = vmatpush3.bf16.msra.mxu1 %v2299_v52  ;;  %v2872_v17 = vpack.c.bf16 %v990_v10, %v989_v9  ;;  %v992_v31 = vld [vmem:[#allocation12] sm:$0xff]  ;;  %v1885_v33 = vld [vmem:[%s3032_s10] ss:$0 sm:$0xff]  ;;  %s2570_s10 = smov 32  }
 0x21e   :  { %v2828_v39 = vadd.f32 %v501_v36, %v362_v58  ;;  %2103 = vmatprep.mubr.msk.f32.mxu1 %vm379_vm7, %v521_v35  ;;  %2304 = vmatprep.subr.bf16.mxu1 %v2303_v54 }
 0x21f   :  { %2104 = vmatmul.mubr.msk.f32.gmra.mrb[12].mxu1 %vm379_vm7, %v522_v37  ;;  %v524_v41 = vmax.f32 %v2826_v38, 0.0 }
 0x220   :  { %v523_v40 = vmax.f32 %v2828_v39, 0.0 }
 0x221   :  { %2306 = vmatpush3.bf16.msra.mxu1 %v2303_v54 }
 0x222   :  { %2106 = vmatprep.mubr.msk.f32.mxu1 %vm379_vm7, %v523_v40  ;;  %2313 = vmatprep.subr.bf16.mxu1 %v2568_v48 }
 0x223   :  { %2107 = vmatmul.mubr.msk.f32.gmra.mrb[14].mxu1 %vm379_vm7, %v524_v41 }
 0x2ea   :  { %v2099_v56 = vpop.f32.mrb[8].mxu1 }
 0x2eb   :  { %v636_v57 = vadd.f32 %v2099_v56, %v1876_v55  ;;  %v630_v58 = vpop.f32.mrb[9].mxu1 }
 0x2ec   :  { %v631_v59 = vadd.f32 %v1876_v55, %v630_v58 }
 0x2ed   :  { %v670_v60 = vadd.f32 %v636_v57, %v518_v21  ;;  %v2916_v57 = vpop.permute.xlu0 %1079 }
 0x2ee   :  { %v669_v63 = vadd.f32 %v631_v59, %v517_v19  ;;  %v2102_v1 = vpop.f32.mrb[10].mxu1 }
 0x2ef   :  { %v646_v2 = vadd.f32 %v2102_v1, %v1876_v55  ;;  %v640_v3 = vpop.f32.mrb[11].mxu1  ;;  %v678_v7 = vmax.f32 %v670_v60, 0.0 }
 0x2f0   :  { %v677_v4 = vmax.f32 %v669_v63, 0.0  ;;  %v641_v5 = vadd.f32 %v1876_v55, %v640_v3  ;;  %v1894_v63 = vld [vmem:[%s3034_s12] ss:$0 sm:$0xff]  ;;  %s2571_s12 = smov 96  }
 0x2f1   :  { %v672_v8 = vadd.f32 %v646_v2, %v520_v29 }
 0x2f2   :  { %v671_v11 = vadd.f32 %v641_v5, %v519_v27  ;;  %v2105_v12 = vpop.f32.mrb[12].mxu1  ;;  %2125 = vmatprep.mubr.msk.f32.mxu0 %vm379_vm7, %v677_v4 }
 0x2f3   :  { %v656_v13 = vadd.f32 %v2105_v12, %v1876_v55  ;;  %v650_v14 = vpop.f32.mrb[13].mxu1  ;;  %2126 = vmatmul.mubr.msk.f32.vlgmr.msra.gmra.mrb[10].mxu0 %vm379_vm7, %v678_v7  ;;  %v680_v18 = vmax.f32 %v672_v8, 0.0 }
 0x2f4   :  { %v679_v15 = vmax.f32 %v671_v11, 0.0  ;;  %v651_v16 = vadd.f32 %v1876_v55, %v650_v14  ;;  %2309 = vmatpush3.bf16.msra.mxu0 %v2859_v6 }
 0x2f5   :  { %v674_v19 = vadd.f32 %v656_v13, %v522_v37  ;;  %2310 = vmatprep.subr.bf16.mxu0 %v2568_v48 }
 0x2f6   :  { %v673_v20 = vadd.f32 %v651_v16, %v521_v35  ;;  %v2108_v21 = vpop.f32.mrb[14].mxu1  ;;  %2128 = vmatprep.mubr.msk.f32.mxu0 %vm379_vm7, %v679_v15 }
 0x2f7   :  { %v666_v22 = vadd.f32 %v2108_v21, %v1876_v55  ;;  %v660_v23 = vpop.f32.mrb[15].mxu1  ;;  %2129 = vmatmul.mubr.msk.f32.gmra.mrb[12].mxu0 %vm379_vm7, %v680_v18  ;;  %v682_v26 = vmax.f32 %v674_v19, 0.0 }
 0x2f8   :  { %v681_v24 = vmax.f32 %v673_v20, 0.0  ;;  %v661_v25 = vadd.f32 %v1876_v55, %v660_v23  ;;  %2312 = vmatpush3.bf16.msra.mxu0 %v2872_v17 }
 0x2f9   :  { %v676_v27 = vadd.f32 %v666_v22, %v524_v41  ;;  %2319 = vmatprep.subr.bf16.mxu0 %v2568_v48 }
 0x2fa   :  { %v675_v28 = vadd.f32 %v661_v25, %v523_v40  ;;  %2131 = vmatprep.mubr.msk.f32.mxu0 %vm379_vm7, %v681_v24 }
 0x2fb   :  { %2132 = vmatmul.mubr.msk.f32.gmra.mrb[14].mxu0 %vm379_vm7, %v682_v26  ;;  %v684_v30 = vmax.f32 %v676_v27, 0.0 }
 0x2fc   :  { %v683_v29 = vmax.f32 %v675_v28, 0.0 }
 0x2fe   :  { %2134 = vmatprep.mubr.msk.f32.mxu0 %vm379_vm7, %v683_v29 }
 0x2ff   :  { %2135 = vmatmul.mubr.msk.f32.gmra.mrb[16].mxu0 %vm379_vm7, %v684_v30 }
 0x300   :  { %2165 = vmatprep.mubr.msk.f32.mxu0 %vm2566_vm0, %v2565_v0 }
 0x303   :  { %2166 = vmatmul.mubr.msk.f32.vlgmr.msra.gmra.mrb[18].mxu0 %vm123_vm8, %v992_v31 }
 0x304   :  { %2321 = vmatpush3.bf16.msra.mxu0 %v2859_v6  ;;  %2187 = vmatprep.mubr.msk.f32.mxu0 %vm2566_vm0, %v2565_v0 }
 0x305   :  { %2322 = vmatprep.subr.bf16.mxu0 %v2568_v48 }
 0x308   :  { %2324 = vmatpush3.bf16.msra.mxu0 %v2872_v17 }
 0x309   :  { %2331 = vmatprep.subr.bf16.mxu0 %v2568_v48 }
 0x3c6   :  { %v2127_v34 = vpop.f32.mrb[10].mxu0 }
 0x3c7   :  { %v796_v35 = vadd.f32 %v2127_v34, %v1885_v33  ;;  %v790_v36 = vpop.f32.mrb[11].mxu0 }
 0x3c8   :  { %v791_v37 = vadd.f32 %v1885_v33, %v790_v36 }
 0x3c9   :  { %v830_v40 = vmax.f32 %v796_v35, 0.0 }
 0x3ca   :  { %v829_v38 = vmax.f32 %v791_v37, 0.0  ;;  %v2130_v39 = vpop.f32.mrb[12].mxu0 }
 0x3cb   :  { %v806_v41 = vadd.f32 %v2130_v39, %v1885_v33  ;;  %v800_v42 = vpop.f32.mrb[13].mxu0 }
 0x3cc   :  { %v801_v43 = vadd.f32 %v1885_v33, %v800_v42  ;;  %2145 = vmatprep.mubr.msk.f32.mxu1 %vm123_vm8, %v829_v38 }
 0x3cd   :  { %2146 = vmatmul.mubr.msk.f32.vlgmr.msra.gmra.mrb[16].mxu1 %vm123_vm8, %v830_v40  ;;  %v832_v46 = vmax.f32 %v806_v41, 0.0 }
 0x3ce   :  { %v831_v44 = vmax.f32 %v801_v43, 0.0  ;;  %v2133_v45 = vpop.f32.mrb[14].mxu0  ;;  %2315 = vmatpush3.bf16.msra.mxu1 %v2859_v6 }
 0x3cf   :  { %v816_v47 = vadd.f32 %v2133_v45, %v1885_v33  ;;  %v810_v49 = vpop.f32.mrb[15].mxu0  ;;  %2316 = vmatprep.subr.bf16.mxu1 %v2568_v48 }
 0x3d0   :  { %v811_v50 = vadd.f32 %v1885_v33, %v810_v49  ;;  %2148 = vmatprep.mubr.msk.f32.mxu1 %vm123_vm8, %v831_v44 }
 0x3d1   :  { %2149 = vmatmul.mubr.msk.f32.gmra.mrb[18].mxu1 %vm123_vm8, %v832_v46  ;;  %v834_v53 = vmax.f32 %v816_v47, 0.0 }
 0x3d2   :  { %v833_v51 = vmax.f32 %v811_v50, 0.0  ;;  %v2136_v52 = vpop.f32.mrb[16].mxu0  ;;  %2318 = vmatpush3.bf16.msra.mxu1 %v2872_v17 }
 0x3d3   :  { %v826_v54 = vadd.f32 %v2136_v52, %v1885_v33  ;;  %v820_v55 = vpop.f32.mrb[17].mxu0  ;;  %2325 = vmatprep.subr.bf16.mxu1 %v2568_v48 }
 0x3d4   :  { %v821_v56 = vadd.f32 %v1885_v33, %v820_v55  ;;  %2151 = vmatprep.mubr.msk.f32.mxu1 %vm123_vm8, %v833_v51 }
 0x3d5   :  { %2152 = vmatmul.mubr.msk.f32.gmra.mrb[20].mxu1 %vm123_vm8, %v834_v53  ;;  %v836_v60 = vmax.f32 %v826_v54, 0.0 }
 0x3d6   :  { %v835_v58 = vmax.f32 %v821_v56, 0.0  ;;  %v1063_v59 = vpop.f32.mrb[18].mxu0 }
 0x3d7   :  { %v1082_v61 = vadd.f32 %v2916_v57, %v1063_v59  ;;  %v2167_v62 = vpop.f32.mrb[19].mxu0 }
 0x3d8   :  { %2154 = vmatprep.mubr.msk.f32.mxu1 %vm123_vm8, %v835_v58 }
 0x3d9   :  { %2155 = vmatmul.mubr.msk.f32.gmra.mrb[22].mxu1 %vm123_vm8, %v836_v60  ;;  %1084 = vrot.lane.b32.xlu0 %v1082_v61, %s2569_s27 }
 0x3da   :  { %2176 = vmatprep.mubr.msk.f32.mxu1 %vm2566_vm0, %v2565_v0 }
 0x3dd   :  { %1100 = vrot.lane.b32.xlu0 %v992_v31, %s2570_s10 }
 0x44b   :  { %v1085_v25 = vpop.permute.xlu0 %1084 }
 0x44f   :  { %v1101_v30 = vpop.permute.xlu0 %1100 }
 0x4a0   :  { %v2147_v1 = vpop.f32.mrb[16].mxu1 }
 0x4a1   :  { %v945_v2 = vadd.f32 %v2147_v1, %v1894_v63  ;;  %v939_v3 = vpop.f32.mrb[17].mxu1 }
 0x4a2   :  { %v940_v4 = vadd.f32 %v1894_v63, %v939_v3 }
 0x4a3   :  { %980 = vst.msk [vmem:[#allocation2 + $0x8] sm:$0xff] %vm978_vm9, %v945_v2 }
 0x4a4   :  { %979 = vst.msk [vmem:[#allocation2] sm:$0xff] %vm978_vm9, %v940_v4  ;;  %v2150_v5 = vpop.f32.mrb[18].mxu1 }
 0x4a5   :  { %v955_v7 = vadd.f32 %v2150_v5, %v1894_v63  ;;  %v949_v8 = vpop.f32.mrb[19].mxu1 }
 0x4a6   :  { %v950_v9 = vadd.f32 %v1894_v63, %v949_v8 }
 0x4a7   :  { %982 = vst.msk [vmem:[#allocation2 + $0x18] sm:$0xff] %vm978_vm9, %v955_v7 }
 0x4a8   :  { %981 = vst.msk [vmem:[#allocation2 + $0x10] sm:$0xff] %vm978_vm9, %v950_v9  ;;  %v2153_v10 = vpop.f32.mrb[20].mxu1 }
 0x4a9   :  { %v965_v11 = vadd.f32 %v2153_v10, %v1894_v63  ;;  %v959_v12 = vpop.f32.mrb[21].mxu1 }
 0x4aa   :  { %v960_v13 = vadd.f32 %v1894_v63, %v959_v12  ;;  %v1106_v40 = vld [vmem:[#allocation2 + $0x8] sm:$0xff] }
 0x4ab   :  { %984 = vst.msk [vmem:[#allocation2 + $0x28] sm:$0xff] %vm978_vm9, %v965_v11  ;;  %v993_v14 = vld [vmem:[#allocation2] sm:$0xff] }
 0x4ac   :  { %983 = vst.msk [vmem:[#allocation2 + $0x20] sm:$0xff] %vm978_vm9, %v960_v13  ;;  %v2156_v15 = vpop.f32.mrb[22].mxu1  ;;  %v1067_v16 = vadd.f32 %v1063_v59, %v993_v14 }
 0x4ad   :  { %v975_v18 = vadd.f32 %v2156_v15, %v1894_v63  ;;  %v969_v19 = vpop.f32.mrb[23].mxu1 }
 0x4ae   :  { %v970_v20 = vadd.f32 %v1894_v63, %v969_v19  ;;  %v1904_v21 = vmul.f32 -1.442695, %v1067_v16 }
 0x4af   :  { %986 = vst.msk [vmem:[#allocation2 + $0x38] sm:$0xff] %vm978_vm9, %v975_v18  ;;  %v1210_v62 = vld [vmem:[#allocation2 + $0x10] sm:$0xff] }
 0x4b0   :  { %985 = vst.msk [vmem:[#allocation2 + $0x30] sm:$0xff] %vm978_vm9, %v970_v20  ;;  %2370 = vpow2.f32 %v1904_v21  ;;  %v1314_v21 = vld [vmem:[#allocation2 + $0x18] sm:$0xff] }
 0x4ba   :  { %v2371_v22 = vpop.eup %2370 }
 0x4bb   :  { %v1071_v23 = vadd.f32 1.0, %v2371_v22 }
 0x4bd   :  { %2372 = vrcp.f32 %v1071_v23 }
 0x4c7   :  { %v2373_v24 = vpop.eup %2372 }
 0x4c8   :  { %v1087_v26 = vmul.f32 %v2373_v24, %v1085_v25  ;;  %v1094_v31 = vsub.f32 1.0, %v2373_v24  ;;  %v1103_v33 = vmul.f32 %v2373_v24, %v1101_v30 }
 0x4ca   :  { %1089 = vrot.lane.b32.xlu1 %v1087_v26, %s2569_s27 }
 0x53c   :  { %v1090_v27 = vpop.permute.xlu1 %1089 }
 0x53d   :  { %v1092_v28 = vadd.f32 %v1090_v27, %v993_v14 }
 0x53f   :  { %2374 = vtanh.f32 %v1092_v28 }
 0x549   :  { %v2375_v29 = vpop.eup %2374 }
 0x54a   :  { %1096 = vrot.lane.b32.xlu1 %v2375_v29, %s2571_s12 }
 0x5bc   :  { %v1097_v32 = vpop.permute.xlu1 %1096 }
 0x5bd   :  { %v1099_v34 = vmul.f32 %v1097_v32, %v1094_v31 }
 0x5bf   :  { %v1104_v35 = vadd.f32 %v1103_v33, %v1099_v34 }
 0x5c1   :  { %1108 = vrot.lane.b32.xlu1 %v1104_v35, %s2571_s12 }
 0x633   :  { %v1109_v36 = vpop.permute.xlu1 %1108 }
 0x634   :  { %2177 = vmatmul.mubr.msk.f32.vlgmr.msra.gmra.mrb[24].mxu1 %vm123_vm8, %v1109_v36 }
 0x635   :  { %2327 = vmatpush3.bf16.msra.mxu1 %v2859_v6  ;;  %2198 = vmatprep.mubr.msk.f32.mxu1 %vm2566_vm0, %v2565_v0 }
 0x636   :  { %2328 = vmatprep.subr.bf16.mxu1 %v2568_v48 }
 0x639   :  { %2330 = vmatpush3.bf16.msra.mxu1 %v2872_v17 }
 0x63a   :  { %2337 = vmatprep.subr.bf16.mxu1 %v2568_v48 }
 0x707   :  { %v1178_v37 = vpop.f32.mrb[24].mxu1 }
 0x708   :  { %v1189_v38 = vadd.f32 %v1178_v37, %v2916_v57  ;;  %v2178_v39 = vpop.f32.mrb[25].mxu1  ;;  %v1182_v41 = vadd.f32 %v1178_v37, %v1106_v40 }
 0x70a   :  { %1191 = vrot.lane.b32.xlu0 %v1189_v38, %s2569_s27  ;;  %v1907_v42 = vmul.f32 -1.442695, %v1182_v41  ;;  %v1418_v41 = vld [vmem:[#allocation2 + $0x20] sm:$0xff] }
 0x70c   :  { %2376 = vpow2.f32 %v1907_v42 }
 0x716   :  { %v2377_v43 = vpop.eup %2376 }
 0x717   :  { %v1186_v44 = vadd.f32 1.0, %v2377_v43 }
 0x719   :  { %2378 = vrcp.f32 %v1186_v44 }
 0x723   :  { %v2379_v45 = vpop.eup %2378 }
 0x724   :  { %v1201_v52 = vsub.f32 1.0, %v2379_v45  ;;  %v1207_v54 = vmul.f32 %v2379_v45, %v1104_v35 }
 0x77c   :  { %v1192_v46 = vpop.permute.xlu0 %1191 }
 0x77d   :  { %v1194_v47 = vmul.f32 %v2379_v45, %v1192_v46 }
 0x77f   :  { %1196 = vrot.lane.b32.xlu1 %v1194_v47, %s2569_s27 }
 0x7f1   :  { %v1197_v49 = vpop.permute.xlu1 %1196 }
 0x7f2   :  { %v1199_v50 = vadd.f32 %v1197_v49, %v1106_v40 }
 0x7f4   :  { %2380 = vtanh.f32 %v1199_v50 }
 0x7fe   :  { %v2381_v51 = vpop.eup %2380 }
 0x7ff   :  { %1203 = vrot.lane.b32.xlu0 %v2381_v51, %s2571_s12 }
 0x871   :  { %v1204_v53 = vpop.permute.xlu0 %1203 }
 0x872   :  { %v1206_v55 = vmul.f32 %v1204_v53, %v1201_v52 }
 0x874   :  { %v1208_v56 = vadd.f32 %v1207_v54, %v1206_v55 }
 0x876   :  { %1212 = vrot.lane.b32.xlu1 %v1208_v56, %s2571_s12 }
 0x8e8   :  { %v1213_v58 = vpop.permute.xlu1 %1212 }
 0x8e9   :  { %2188 = vmatmul.mubr.msk.f32.vlgmr.msra.gmra.mrb[20].mxu0 %vm123_vm8, %v1213_v58 }
 0x8ea   :  { %2333 = vmatpush3.bf16.msra.mxu0 %v2859_v6  ;;  %2209 = vmatprep.mubr.msk.f32.mxu0 %vm2566_vm0, %v2565_v0 }
 0x8eb   :  { %2334 = vmatprep.subr.bf16.mxu0 %v2568_v48 }
 0x8ee   :  { %2336 = vmatpush3.bf16.msra.mxu0 %v2872_v17 }
 0x8ef   :  { %2343 = vmatprep.subr.bf16.mxu0 %v2568_v48 }
 0x9bc   :  { %v1282_v59 = vpop.f32.mrb[20].mxu0 }
 0x9bd   :  { %v1293_v60 = vadd.f32 %v1282_v59, %v2916_v57  ;;  %v2189_v61 = vpop.f32.mrb[21].mxu0  ;;  %v1286_v63 = vadd.f32 %v1282_v59, %v1210_v62 }
 0x9bf   :  { %1295 = vrot.lane.b32.xlu0 %v1293_v60, %s2569_s27  ;;  %v1909_v1 = vmul.f32 -1.442695, %v1286_v63  ;;  %v1522_v63 = vld [vmem:[#allocation2 + $0x28] sm:$0xff] }
 0x9c1   :  { %2382 = vpow2.f32 %v1909_v1 }
 0x9cb   :  { %v2383_v2 = vpop.eup %2382 }
 0x9cc   :  { %v1290_v3 = vadd.f32 1.0, %v2383_v2 }
 0x9ce   :  { %2384 = vrcp.f32 %v1290_v3 }
 0x9d8   :  { %v2385_v4 = vpop.eup %2384 }
 0x9d9   :  { %v1305_v11 = vsub.f32 1.0, %v2385_v4  ;;  %v1311_v13 = vmul.f32 %v2385_v4, %v1208_v56 }
 0xa31   :  { %v1296_v5 = vpop.permute.xlu0 %1295 }
 0xa32   :  { %v1298_v7 = vmul.f32 %v2385_v4, %v1296_v5 }
 0xa34   :  { %1300 = vrot.lane.b32.xlu1 %v1298_v7, %s2569_s27 }
 0xaa6   :  { %v1301_v8 = vpop.permute.xlu1 %1300 }
 0xaa7   :  { %v1303_v9 = vadd.f32 %v1301_v8, %v1210_v62 }
 0xaa9   :  { %2386 = vtanh.f32 %v1303_v9 }
 0xab3   :  { %v2387_v10 = vpop.eup %2386 }
 0xab4   :  { %1307 = vrot.lane.b32.xlu0 %v2387_v10, %s2571_s12 }
 0xb26   :  { %v1308_v12 = vpop.permute.xlu0 %1307 }
 0xb27   :  { %v1310_v14 = vmul.f32 %v1308_v12, %v1305_v11 }
 0xb29   :  { %v1312_v15 = vadd.f32 %v1311_v13, %v1310_v14 }
 0xb2b   :  { %1316 = vrot.lane.b32.xlu1 %v1312_v15, %s2571_s12 }
 0xb9d   :  { %v1317_v16 = vpop.permute.xlu1 %1316 }
 0xb9e   :  { %2199 = vmatmul.mubr.msk.f32.vlgmr.msra.gmra.mrb[26].mxu1 %vm123_vm8, %v1317_v16 }
 0xb9f   :  { %2339 = vmatpush3.bf16.msra.mxu1 %v2859_v6  ;;  %2220 = vmatprep.mubr.msk.f32.mxu1 %vm2566_vm0, %v2565_v0 }
 0xba0   :  { %2340 = vmatprep.subr.bf16.mxu1 %v2568_v48 }
 0xba3   :  { %2342 = vmatpush3.bf16.msra.mxu1 %v2872_v17 }
 0xba4   :  { %2349 = vmatprep.subr.bf16.mxu1 %v2568_v48 }
 0xc71   :  { %v1386_v18 = vpop.f32.mrb[26].mxu1 }
 0xc72   :  { %v1397_v19 = vadd.f32 %v1386_v18, %v2916_v57  ;;  %v2200_v20 = vpop.f32.mrb[27].mxu1  ;;  %v1390_v22 = vadd.f32 %v1386_v18, %v1314_v21  ;;  %v1626_v18 = vld [vmem:[#allocation2 + $0x30] sm:$0xff] }
 0xc74   :  { %1399 = vrot.lane.b32.xlu0 %v1397_v19, %s2569_s27  ;;  %v1911_v23 = vmul.f32 -1.442695, %v1390_v22 }
 0xc76   :  { %2388 = vpow2.f32 %v1911_v23 }
 0xc80   :  { %v2389_v24 = vpop.eup %2388 }
 0xc81   :  { %v1394_v25 = vadd.f32 1.0, %v2389_v24 }
 0xc83   :  { %2390 = vrcp.f32 %v1394_v25 }
 0xc8d   :  { %v2391_v26 = vpop.eup %2390 }
 0xc8e   :  { %v1409_v32 = vsub.f32 1.0, %v2391_v26  ;;  %v1415_v34 = vmul.f32 %v2391_v26, %v1312_v15 }
 0xce6   :  { %v1400_v27 = vpop.permute.xlu0 %1399 }
 0xce7   :  { %v1402_v28 = vmul.f32 %v2391_v26, %v1400_v27 }
 0xce9   :  { %1404 = vrot.lane.b32.xlu1 %v1402_v28, %s2569_s27 }
 0xd5b   :  { %v1405_v29 = vpop.permute.xlu1 %1404 }
 0xd5c   :  { %v1407_v30 = vadd.f32 %v1405_v29, %v1314_v21 }
 0xd5e   :  { %2392 = vtanh.f32 %v1407_v30 }
 0xd68   :  { %v2393_v31 = vpop.eup %2392 }
 0xd69   :  { %1411 = vrot.lane.b32.xlu0 %v2393_v31, %s2571_s12 }
 0xddb   :  { %v1412_v33 = vpop.permute.xlu0 %1411 }
 0xddc   :  { %v1414_v35 = vmul.f32 %v1412_v33, %v1409_v32 }
 0xdde   :  { %v1416_v36 = vadd.f32 %v1415_v34, %v1414_v35 }
 0xde0   :  { %1420 = vrot.lane.b32.xlu1 %v1416_v36, %s2571_s12 }
 0xe52   :  { %v1421_v37 = vpop.permute.xlu1 %1420 }
 0xe53   :  { %2210 = vmatmul.mubr.msk.f32.vlgmr.msra.gmra.mrb[22].mxu0 %vm123_vm8, %v1421_v37 }
 0xe54   :  { %2345 = vmatpush3.bf16.msra.mxu0 %v2859_v6  ;;  %2231 = vmatprep.mubr.msk.f32.mxu0 %vm2566_vm0, %v2565_v0 }
 0xe55   :  { %2346 = vmatprep.subr.bf16.mxu0 %v2568_v48 }
 0xe58   :  { %2348 = vmatpush3.bf16.msra.mxu0 %v2872_v17 }
 0xf26   :  { %v1490_v38 = vpop.f32.mrb[22].mxu0 }
 0xf27   :  { %v1501_v39 = vadd.f32 %v1490_v38, %v2916_v57  ;;  %v2211_v40 = vpop.f32.mrb[23].mxu0  ;;  %v1494_v42 = vadd.f32 %v1490_v38, %v1418_v41  ;;  %v1730_v38 = vld [vmem:[#allocation2 + $0x38] sm:$0xff] }
 0xf29   :  { %1503 = vrot.lane.b32.xlu0 %v1501_v39, %s2569_s27  ;;  %v1913_v43 = vmul.f32 -1.442695, %v1494_v42 }
 0xf2b   :  { %2394 = vpow2.f32 %v1913_v43 }
 0xf35   :  { %v2395_v44 = vpop.eup %2394 }
 0xf36   :  { %v1498_v45 = vadd.f32 1.0, %v2395_v44 }
 0xf38   :  { %2396 = vrcp.f32 %v1498_v45 }
 0xf42   :  { %v2397_v46 = vpop.eup %2396 }
 0xf43   :  { %v1513_v53 = vsub.f32 1.0, %v2397_v46  ;;  %v1519_v55 = vmul.f32 %v2397_v46, %v1416_v36 }
 0xf9b   :  { %v1504_v47 = vpop.permute.xlu0 %1503 }
 0xf9c   :  { %v1506_v49 = vmul.f32 %v2397_v46, %v1504_v47 }
 0xf9e   :  { %1508 = vrot.lane.b32.xlu1 %v1506_v49, %s2569_s27 }
0x1010   :  { %v1509_v50 = vpop.permute.xlu1 %1508 }
0x1011   :  { %v1511_v51 = vadd.f32 %v1509_v50, %v1418_v41 }
0x1013   :  { %2398 = vtanh.f32 %v1511_v51 }
0x101d   :  { %v2399_v52 = vpop.eup %2398 }
0x101e   :  { %1515 = vrot.lane.b32.xlu0 %v2399_v52, %s2571_s12 }
0x1090   :  { %v1516_v54 = vpop.permute.xlu0 %1515 }
0x1091   :  { %v1518_v56 = vmul.f32 %v1516_v54, %v1513_v53 }
0x1093   :  { %v1520_v58 = vadd.f32 %v1519_v55, %v1518_v56 }
0x1095   :  { %1524 = vrot.lane.b32.xlu1 %v1520_v58, %s2571_s12 }
0x1107   :  { %v1525_v59 = vpop.permute.xlu1 %1524 }
0x1108   :  { %2221 = vmatmul.mubr.msk.f32.vlgmr.msra.gmra.mrb[28].mxu1 %vm123_vm8, %v1525_v59 }
0x1109   :  { %2351 = vmatpush3.bf16.msra.mxu1 %v2859_v6  ;;  %2242 = vmatprep.mubr.msk.f32.mxu1 %vm2566_vm0, %v2565_v0 }
0x110a   :  { %2352 = vmatprep.subr.bf16.mxu1 %v2568_v48 }
0x110d   :  { %2354 = vmatpush3.bf16.msra.mxu1 %v2872_v17 }
0x11db   :  { %v1594_v60 = vpop.f32.mrb[28].mxu1 }
0x11dc   :  { %v1605_v61 = vadd.f32 %v1594_v60, %v2916_v57  ;;  %v2222_v62 = vpop.f32.mrb[29].mxu1  ;;  %v1598_v1 = vadd.f32 %v1594_v60, %v1522_v63 }
0x11de   :  { %1607 = vrot.lane.b32.xlu0 %v1605_v61, %s2569_s27  ;;  %v1915_v2 = vmul.f32 -1.442695, %v1598_v1 }
0x11e0   :  { %2400 = vpow2.f32 %v1915_v2 }
0x11ea   :  { %v2401_v3 = vpop.eup %2400 }
0x11eb   :  { %v1602_v4 = vadd.f32 1.0, %v2401_v3 }
0x11ed   :  { %2402 = vrcp.f32 %v1602_v4 }
0x11f7   :  { %v2403_v6 = vpop.eup %2402 }
0x11f8   :  { %v1617_v8 = vsub.f32 1.0, %v2403_v6  ;;  %v1623_v10 = vmul.f32 %v2403_v6, %v1520_v58 }
0x1250   :  { %v1608_v5 = vpop.permute.xlu0 %1607 }
0x1251   :  { %v1610_v0 = vmul.f32 %v2403_v6, %v1608_v5 }
0x1253   :  { %1612 = vrot.lane.b32.xlu1 %v1610_v0, %s2569_s27 }
0x12c5   :  { %v1613_v48 = vpop.permute.xlu1 %1612 }
0x12c6   :  { %v1615_v17 = vadd.f32 %v1613_v48, %v1522_v63 }
0x12c8   :  { %2404 = vtanh.f32 %v1615_v17 }
0x12d2   :  { %v2405_v7 = vpop.eup %2404 }
0x12d3   :  { %1619 = vrot.lane.b32.xlu0 %v2405_v7, %s2571_s12 }
0x1345   :  { %v1620_v9 = vpop.permute.xlu0 %1619 }
0x1346   :  { %v1622_v11 = vmul.f32 %v1620_v9, %v1617_v8 }
0x1348   :  { %v1624_v12 = vadd.f32 %v1623_v10, %v1622_v11 }
0x134a   :  { %1628 = vrot.lane.b32.xlu1 %v1624_v12, %s2571_s12 }
0x13bc   :  { %v1629_v13 = vpop.permute.xlu1 %1628 }
0x13bd   :  { %2232 = vmatmul.mubr.msk.f32.vlgmr.msra.gmra.mrb[24].mxu0 %vm123_vm8, %v1629_v13 }
0x1490   :  { %v1698_v14 = vpop.f32.mrb[24].mxu0 }
0x1491   :  { %v1709_v15 = vadd.f32 %v1698_v14, %v2916_v57  ;;  %v2233_v16 = vpop.f32.mrb[25].mxu0  ;;  %v1702_v19 = vadd.f32 %v1698_v14, %v1626_v18 }
0x1493   :  { %1711 = vrot.lane.b32.xlu0 %v1709_v15, %s2569_s27  ;;  %v1917_v20 = vmul.f32 -1.442695, %v1702_v19 }
0x1495   :  { %2406 = vpow2.f32 %v1917_v20 }
0x149f   :  { %v2407_v21 = vpop.eup %2406 }
0x14a0   :  { %v1706_v22 = vadd.f32 1.0, %v2407_v21 }
0x14a2   :  { %2408 = vrcp.f32 %v1706_v22 }
0x14ac   :  { %v2409_v23 = vpop.eup %2408 }
0x14ad   :  { %v1721_v29 = vsub.f32 1.0, %v2409_v23  ;;  %v1727_v31 = vmul.f32 %v2409_v23, %v1624_v12 }
0x1505   :  { %v1712_v24 = vpop.permute.xlu0 %1711 }
0x1506   :  { %v1714_v25 = vmul.f32 %v2409_v23, %v1712_v24 }
0x1508   :  { %1716 = vrot.lane.b32.xlu1 %v1714_v25, %s2569_s27 }
0x157a   :  { %v1717_v26 = vpop.permute.xlu1 %1716 }
0x157b   :  { %v1719_v27 = vadd.f32 %v1717_v26, %v1626_v18 }
0x157d   :  { %2410 = vtanh.f32 %v1719_v27 }
0x1587   :  { %v2411_v28 = vpop.eup %2410 }
0x1588   :  { %1723 = vrot.lane.b32.xlu0 %v2411_v28, %s2571_s12 }
0x15fa   :  { %v1724_v30 = vpop.permute.xlu0 %1723 }
0x15fb   :  { %v1726_v32 = vmul.f32 %v1724_v30, %v1721_v29 }
0x15fd   :  { %v1728_v33 = vadd.f32 %v1727_v31, %v1726_v32 }
0x15ff   :  { %1732 = vrot.lane.b32.xlu1 %v1728_v33, %s2571_s12 }
0x1671   :  { %v1733_v34 = vpop.permute.xlu1 %1732 }
0x1672   :  { %2243 = vmatmul.mubr.msk.f32.vlgmr.msra.gmra.mrb[30].mxu1 %vm123_vm8, %v1733_v34 }
0x1745   :  { %v1802_v35 = vpop.f32.mrb[30].mxu1 }
0x1746   :  { %v1813_v36 = vadd.f32 %v1802_v35, %v2916_v57  ;;  %v2244_v37 = vpop.f32.mrb[31].mxu1  ;;  %v1806_v39 = vadd.f32 %v1802_v35, %v1730_v38 }
0x1748   :  { %1815 = vrot.lane.b32.xlu0 %v1813_v36, %s2569_s27  ;;  %v1919_v40 = vmul.f32 -1.442695, %v1806_v39 }
0x174a   :  { %2412 = vpow2.f32 %v1919_v40 }
0x1754   :  { %v2413_v41 = vpop.eup %2412 }
0x1755   :  { %v1810_v42 = vadd.f32 1.0, %v2413_v41 }
0x1757   :  { %2414 = vrcp.f32 %v1810_v42 }
0x1761   :  { %v2415_v43 = vpop.eup %2414 }
0x1762   :  { %v1825_v57 = vsub.f32 1.0, %v2415_v43  ;;  %v1831_v51 = vmul.f32 %v2415_v43, %v1728_v33 }
0x17ba   :  { %v1816_v44 = vpop.permute.xlu0 %1815 }
0x17bb   :  { %v1818_v45 = vmul.f32 %v2415_v43, %v1816_v44 }
0x17bd   :  { %1820 = vrot.lane.b32.xlu1 %v1818_v45, %s2569_s27 }
0x182f   :  { %v1821_v46 = vpop.permute.xlu1 %1820 }
0x1830   :  { %v1823_v47 = vadd.f32 %v1821_v46, %v1730_v38 }
0x1832   :  { %2416 = vtanh.f32 %v1823_v47 }
0x183c   :  { %v2417_v49 = vpop.eup %2416 }
0x183d   :  { %1827 = vrot.lane.b32.xlu0 %v2417_v49, %s2571_s12 }
0x18af   :  { %v1828_v50 = vpop.permute.xlu0 %1827 }
0x18b0   :  { %v1830_v52 = vmul.f32 %v1828_v50, %v1825_v57 }
0x18b2   :  { %v1832_v53 = vadd.f32 %v1831_v51, %v1830_v52 }
0x18b4   :  { %1834 = vrot.lane.b32.xlu1 %v1832_v53, %s2571_s12 }
0x1926   :  { %v1835_v54 = vpop.permute.xlu1 %1834 }
0x1927   :  { %1837 = vst.msk [vmem:[#allocation12] sm:$0xff] %vm123_vm8, %v1835_v54 }
0x1928   :  { %2539 = shalt.err (!%p2536_p2)
}
0x1929   :  { %s2540_s22 = scalar_lea.hbm %s3037_s15, 128 }
0x192a   :  { %p2541_p3 = scmp.ne.s32.totalorder %s3037_s15, %s2540_s22  ;;  %p2544_p4 = scmp.lt.u32.totalorder %s2540_s22, %s3037_s15 }
0x192c   :  { %p2546_p5 = pnand %p2544_p4, %p2541_p3 }
0x192e   :  { %2549 = shalt.err (!%p2546_p5)
}
0x192f   :  { %1847 = dma.vmem_to_hbm [thread:$0]  %s1845_s5, 128, %s3037_s15, [#allocation5]  }
0x1930   :  { %2556 = dma.done.wait [#allocation5], 128  }
0x1931   :  { %2557 = vsyncadd [#allocation5], 4294967168 }
0x1932   :  { %1851 = vsyncpa [#allocation4], 1 }
0x1933   :  { %1852 = vsyncpa [#allocation7], 1 }
0x1934   :  { %1853 = vsyncpa [#allocation10], 1 }
0x1935   :  { %1854 = vsyncpa [#allocation5], 1 }

</bundles_post_ra>
